<compile_context>
chip_gen: v7x
topology: tpu7x:2x2x1
jax: 0.10.0
libtpu: 0.0.40
codegen_flags: <defaults>
</compile_context>

<pallas_src>
import jax
import jax.numpy as jnp
from jax.experimental import pallas as pl
from jax.experimental.pallas import tpu as pltpu  # noqa: F401


# ----------------------------------------------------------------------------
# Pallas kernel 1: fused (Cout,K)@(K,N) matmul + per-row affine + ReLU
# ----------------------------------------------------------------------------
def _mm_affine_relu_kernel(w_ref, scale_ref, shift_ref, p_ref, o_ref):
    z = jnp.dot(w_ref[...], p_ref[...], preferred_element_type=jnp.float32)
    o_ref[...] = jnp.maximum(z * scale_ref[...] + shift_ref[...], 0.0).astype(o_ref.dtype)


def mm_affine_relu(w, scale, shift, patches, out_dtype):
    """w: (Cout, K) bf16; scale/shift: (Cout, 1) f32; patches: (K, N) bf16.

    Single invocation (no grid): all operands are full-extent VMEM blocks
    (total < 300 KB), N = B*Ho*Wo sits on lanes (lane-dense store), Cout on
    sublanes.  Accumulation in f32, epilogue (scale/shift/ReLU) in f32.
    """
    Cout = w.shape[0]
    N = patches.shape[1]
    return pl.pallas_call(
        _mm_affine_relu_kernel,
        out_shape=jax.ShapeDtypeStruct((Cout, N), out_dtype),
    )(w, scale, shift, patches)


# ----------------------------------------------------------------------------
# Pallas kernel 2: fully fused FC chain fc1 -> fc2 -> fc3 -> fc4 (bias + ReLU)
# ----------------------------------------------------------------------------
def _fc_chain_kernel(x_ref, w1_ref, b1_ref, w2_ref, b2_ref, w3_ref, b3_ref,
                     w4_ref, b4_ref, enc_ref, out_ref):
    # TODO(synk): Dropout(p=0.1) between the FC layers is identity in eval mode.
    h = jnp.dot(x_ref[...], w1_ref[...], preferred_element_type=jnp.float32)
    h = jnp.maximum(h + b1_ref[...], 0.0)
    e = jnp.dot(h.astype(jnp.bfloat16), w2_ref[...], preferred_element_type=jnp.float32)
    e = jnp.maximum(e + b2_ref[...], 0.0)
    enc_ref[...] = e.astype(enc_ref.dtype)
    h = jnp.dot(e.astype(jnp.bfloat16), w3_ref[...], preferred_element_type=jnp.float32)
    h = jnp.maximum(h + b3_ref[...], 0.0)
    h = jnp.dot(h.astype(jnp.bfloat16), w4_ref[...], preferred_element_type=jnp.float32)
    h = jnp.maximum(h + b4_ref[...], 0.0)
    out_ref[...] = h.astype(out_ref.dtype)


def fc_chain(x, pk):
    """x: (B, 1792) bf16 -> (encoded (B,16) f32, h4 (B,1792) bf16) in one call."""
    B = x.shape[0]
    return pl.pallas_call(
        _fc_chain_kernel,
        out_shape=(jax.ShapeDtypeStruct((B, pk["fc2w"].shape[1]), jnp.float32),
                   jax.ShapeDtypeStruct((B, pk["fc4w"].shape[1]), jnp.bfloat16)),
    )(x, pk["fc1w"], pk["fc1b"], pk["fc2w"], pk["fc2b"],
      pk["fc3w"], pk["fc3b"], pk["fc4w"], pk["fc4b"])


# ----------------------------------------------------------------------------
# Plain-JAX glue: channel-major im2col (static strided slices), sub-pixel DTS
# ----------------------------------------------------------------------------
def _patches_cm(x_cm, k, stride, pad):
    """x_cm (C, B, H, W) -> patches (C*k*k, B*Ho*Wo), K ordered (c, kh*k+kw)."""
    if pad:
        x_cm = jnp.pad(x_cm, ((0, 0), (0, 0), (pad, pad), (pad, pad)))
    C, B, H, W = x_cm.shape
    Ho = (H - k) // stride + 1
    Wo = (W - k) // stride + 1
    taps = [x_cm[:, :, kh:kh + stride * (Ho - 1) + 1:stride,
                   kw:kw + stride * (Wo - 1) + 1:stride]
            for kh in range(k) for kw in range(k)]
    p = jnp.stack(taps, axis=1)                    # (C, k*k, B, Ho, Wo)
    return p.reshape(C * k * k, B * Ho * Wo), Ho, Wo


def conv_bn_relu(x_cm, w, scale, shift, k, stride, pad, out_dtype):
    """Conv2d + BatchNorm2d(eval) + ReLU; channel-major (C,B,H,W) in/out."""
    B = x_cm.shape[1]
    p, Ho, Wo = _patches_cm(x_cm, k, stride, pad)
    y = mm_affine_relu(w, scale, shift, p, out_dtype)          # (Cout, B*Ho*Wo)
    return y.reshape(w.shape[0], B, Ho, Wo)


def deconv_bn_relu(x_cm, w_sub, scale, shift, H_out, W_out, batch_major_out=False):
    """ConvTranspose2d(k=5,s=3,p=1,op=1) + BN(eval) + ReLU via sub-pixel conv.

    Stride-1 conv (2x2 taps, Cout*9 channels) on a 1-padded input, then
    depth-to-space (block 3) + crop: y[oh,ow] lives at DTS index (oh+1, ow+1).
    Kept in bf16 throughout.
    """
    Cout = w_sub.shape[0] // 9
    B = x_cm.shape[1]
    p, Hq, Wq = _patches_cm(x_cm, k=2, stride=1, pad=1)         # Hq=H+1, Wq=W+1
    z = mm_affine_relu(w_sub, scale, shift, p, jnp.bfloat16)    # (Cout*9, B*Hq*Wq)
    z = z.reshape(Cout, 3, 3, B, Hq, Wq)                        # (co, rh, rw, b, qh, qw)
    if batch_major_out:
        z = z.transpose(3, 0, 4, 1, 5, 2).reshape(B, Cout, 3 * Hq, 3 * Wq)
        return z[:, :, 1:1 + H_out, 1:1 + W_out]                # (B, Cout, H_out, W_out)
    z = z.transpose(0, 3, 4, 1, 5, 2).reshape(Cout, B, 3 * Hq, 3 * Wq)
    return z[:, :, 1:1 + H_out, 1:1 + W_out]                    # (Cout, B, H_out, W_out)


# ----------------------------------------------------------------------------
# One-time weight packing (BN fold, layout transform, bf16 cast)
# ----------------------------------------------------------------------------
def _pack_conv_weight(W):
    Cout, Cin, k, _ = W.shape
    return W.reshape(Cout, Cin * k * k).astype(jnp.bfloat16)    # exactly k*k taps (no pad)


def _pack_deconv_weight(Wt):
    """(Cin, Cout, 5, 5) ConvTranspose2d weight -> (Cout*9, Cin*4) sub-pixel weight.

    Valid for k=5, stride=3, padding=1, output_padding=1.  Row index is
    co*9 + rh*3 + rw; column index is ci*4 + dh*2 + dw; tap dh maps to kernel
    row kh = rh + 3*(1-dh) (dropped when kh > 4).
    """
    Cin, Cout, k, _ = Wt.shape
    s, kk = 3, 2
    out = jnp.zeros((Cout, s, s, Cin, kk, kk), Wt.dtype)
    for rh in range(s):
        for dh in range(kk):
            kh = rh + s * (1 - dh)
            if kh >= k:
                continue
            for rw in range(s):
                for dw in range(kk):
                    kw = rw + s * (1 - dw)
                    if kw >= k:
                        continue
                    out = out.at[:, rh, rw, :, dh, dw].set(Wt[:, :, kh, kw].T)
    return out.reshape(Cout * s * s, Cin * kk * kk).astype(jnp.bfloat16)


def pack_params(p, eps=1e-5):
    def bn_fold(bias, gamma, beta, mean, var):
        s = gamma / jnp.sqrt(var + eps)
        return (s.astype(jnp.float32)[:, None],
                (bias * s + beta - mean * s).astype(jnp.float32)[:, None])

    c1s, c1h = bn_fold(p["c1b"], *p["bn1"])
    c2s, c2h = bn_fold(p["c2b"], *p["bn2"])
    s3, h3 = bn_fold(p["c3b"], *p["bn3"])
    s4, h4 = bn_fold(p["c4b"], *p["bn4"])

    return dict(
        c1w=_pack_conv_weight(p["c1w"]), c1s=c1s, c1h=c1h,
        c2w=_pack_conv_weight(p["c2w"]), c2s=c2s, c2h=c2h,
        fc1w=p["fc1w"].astype(jnp.bfloat16), fc1b=p["fc1b"][None, :].astype(jnp.float32),
        fc2w=p["fc2w"].astype(jnp.bfloat16), fc2b=p["fc2b"][None, :].astype(jnp.float32),
        fc3w=p["fc3w"].astype(jnp.bfloat16), fc3b=p["fc3b"][None, :].astype(jnp.float32),
        fc4w=p["fc4w"].astype(jnp.bfloat16), fc4b=p["fc4b"][None, :].astype(jnp.float32),
        c3w=_pack_deconv_weight(p["c3w"]),
        c3s=jnp.repeat(s3, 9, axis=0), c3h=jnp.repeat(h3, 9, axis=0),
        c4w=_pack_deconv_weight(p["c4w"]),
        c4s=jnp.repeat(s4, 9, axis=0), c4h=jnp.repeat(h4, 9, axis=0),
    )


# ----------------------------------------------------------------------------
# Parameters (deterministic, shapes from AE.__init__)
# ----------------------------------------------------------------------------
def init_params(key):
    ks = iter(jax.random.split(key, 64))

    def w(shape, s=0.05):
        return jax.random.normal(next(ks), shape, jnp.float32) * s

    def bn(c):
        gamma = jax.random.uniform(next(ks), (c,), jnp.float32, 0.5, 1.5)
        beta = jax.random.normal(next(ks), (c,), jnp.float32) * 0.1
        mean = jax.random.normal(next(ks), (c,), jnp.float32) * 0.1
        var = jax.random.uniform(next(ks), (c,), jnp.float32, 0.5, 1.5)
        return (gamma, beta, mean, var)

    return dict(
        c1w=w((8, 1, 5, 5)), c1b=w((8,), 0.01), bn1=bn(8),
        c2w=w((16, 8, 5, 5)), c2b=w((16,), 0.01), bn2=bn(16),
        fc1w=w((16 * 28 * 4, 128)), fc1b=w((128,), 0.01),
        fc2w=w((128, 16)), fc2b=w((16,), 0.01),
        fc3w=w((16, 128)), fc3b=w((128,), 0.01),
        fc4w=w((128, 16 * 28 * 4)), fc4b=w((16 * 28 * 4,), 0.01),
        c3w=w((16, 8, 5, 5)), c3b=w((8,), 0.01), bn3=bn(8),   # ConvTranspose: (Cin,Cout,k,k)
        c4w=w((8, 1, 5, 5)), c4b=w((1,), 0.01), bn4=bn(1),
    )


# ----------------------------------------------------------------------------
# Forward pass (mirrors AE.forward, eval mode)
# ----------------------------------------------------------------------------
@jax.jit
def ae_forward(x, pk):
    B = x.shape[0]
    x = x.astype(jnp.bfloat16).transpose(1, 0, 2, 3)                 # (1, B, 252, 36) channel-major
    x = conv_bn_relu(x, pk["c1w"], pk["c1s"], pk["c1h"], 5, 3, 1, jnp.bfloat16)   # (8, B, 84, 12)
    x = conv_bn_relu(x, pk["c2w"], pk["c2s"], pk["c2h"], 5, 3, 1, jnp.bfloat16)   # (16, B, 28, 4)
    xf = x.transpose(1, 0, 2, 3).reshape(B, -1)                      # (B, 1792)  == torch .view order
    encoded, h = fc_chain(xf, pk)                                    # (B,16) f32, (B,1792) bf16
    x = h.reshape(B, 16, 28, 4).transpose(1, 0, 2, 3)                # (16, B, 28, 4) channel-major
    x = deconv_bn_relu(x, pk["c3w"], pk["c3s"], pk["c3h"], 85, 13)   # (8, B, 85, 13) bf16
    d = deconv_bn_relu(x, pk["c4w"], pk["c4s"], pk["c4h"], 256, 40,
                       batch_major_out=True)                         # (B, 1, 256, 40) bf16
    decoded = d.astype(jnp.float32)                                  # single final f32 cast
    return encoded.reshape(B, 1, 1, 16), decoded


# ----------------------------------------------------------------------------
if __name__ == "__main__":
    key = jax.random.PRNGKey(0)
    pkey, xkey = jax.random.split(key)
    params = init_params(pkey)
    packed = pack_params(params)   # one-time pre-pack (BN fold, layouts, bf16)

    # Input spatial size chosen so that conv2 output is exactly (16, 28, 4),
    # as required by fc1 (16*28*4 = 1792):  252x36 -> 84x12 -> 28x4.
    x = jax.random.normal(xkey, (2, 1, 252, 36), jnp.float32)

    encoded, decoded = ae_forward(x, packed)
    jax.block_until_ready((encoded, decoded))

    assert encoded.shape == (2, 1, 1, 16), encoded.shape
    assert decoded.shape == (2, 1, 256, 40), decoded.shape
    assert bool(jnp.all(jnp.isfinite(encoded))) and bool(jnp.all(jnp.isfinite(decoded)))
    assert bool(jnp.all(encoded >= 0)) and bool(jnp.all(decoded >= 0))  # ReLU outputs

    print("KERNEL_OK")
</pallas_src>

<mosaic_0001>
module attributes {stable_mosaic.version = 11 : i64} {
  func.func @_mm_affine_relu_kernel(%arg0: memref<8x25xbf16, #tpu.memory_space<vmem>>, %arg1: memref<8x1xf32, #tpu.memory_space<vmem>>, %arg2: memref<8x1xf32, #tpu.memory_space<vmem>>, %arg3: memref<25x2016xbf16, #tpu.memory_space<vmem>>, %arg4: memref<8x2016xbf16, #tpu.memory_space<vmem>>) attributes {dimension_semantics = [], scalar_prefetch = 0 : i64, scratch_operands = 0 : i64, tpu.core_type = #tpu.core_type<tc>} {
    %c0 = arith.constant 0 : index
    %c0_0 = arith.constant 0 : index
    %0 = vector.load %arg0[%c0, %c0_0] : memref<8x25xbf16, #tpu.memory_space<vmem>>, vector<8x25xbf16>
    %c0_1 = arith.constant 0 : index
    %c0_2 = arith.constant 0 : index
    %1 = vector.load %arg3[%c0_1, %c0_2] : memref<25x2016xbf16, #tpu.memory_space<vmem>>, vector<25x2016xbf16>
    %cst = arith.constant dense<0.000000e+00> : vector<8x2016xf32>
    %2 = tpu.matmul %0, %1, %cst {dimension_numbers = #tpu.dot_dimension_numbers<[1], [0], [0], [1], [0, 0, 1, 1], [], []>} : vector<8x25xbf16>, vector<25x2016xbf16>, vector<8x2016xf32> -> vector<8x2016xf32>
    %c0_3 = arith.constant 0 : index
    %c0_4 = arith.constant 0 : index
    %3 = vector.load %arg1[%c0_3, %c0_4] : memref<8x1xf32, #tpu.memory_space<vmem>>, vector<8x1xf32>
    %4 = vector.broadcast %3 : vector<8x1xf32> to vector<8x2016xf32>
    %5 = arith.mulf %2, %4 : vector<8x2016xf32>
    %c0_5 = arith.constant 0 : index
    %c0_6 = arith.constant 0 : index
    %6 = vector.load %arg2[%c0_5, %c0_6] : memref<8x1xf32, #tpu.memory_space<vmem>>, vector<8x1xf32>
    %7 = vector.broadcast %6 : vector<8x1xf32> to vector<8x2016xf32>
    %8 = arith.addf %5, %7 : vector<8x2016xf32>
    %cst_7 = arith.constant 0.000000e+00 : f32
    %9 = vector.broadcast %cst_7 : f32 to vector<8x2016xf32>
    %10 = arith.maximumf %8, %9 : vector<8x2016xf32>
    %11 = arith.truncf %10 : vector<8x2016xf32> to vector<8x2016xbf16>
    %c0_8 = arith.constant 0 : index
    %c0_9 = arith.constant 0 : index
    %12 = vector.load %arg4[%c0_8, %c0_9] : memref<8x2016xbf16, #tpu.memory_space<vmem>>, vector<8x2016xbf16>
    tpu.vector_store %arg4[%c0_8, %c0_9], %11 {strides = array<i32>} : memref<8x2016xbf16, #tpu.memory_space<vmem>>, vector<8x2016xbf16>,
    return
  }
}

module attributes {stable_mosaic.version = 11 : i64} {
  func.func @_mm_affine_relu_kernel(%arg0: memref<16x200xbf16, #tpu.memory_space<vmem>>, %arg1: memref<16x1xf32, #tpu.memory_space<vmem>>, %arg2: memref<16x1xf32, #tpu.memory_space<vmem>>, %arg3: memref<200x224xbf16, #tpu.memory_space<vmem>>, %arg4: memref<16x224xbf16, #tpu.memory_space<vmem>>) attributes {dimension_semantics = [], scalar_prefetch = 0 : i64, scratch_operands = 0 : i64, tpu.core_type = #tpu.core_type<tc>} {
    %c0 = arith.constant 0 : index
    %c0_0 = arith.constant 0 : index
    %0 = vector.load %arg0[%c0, %c0_0] : memref<16x200xbf16, #tpu.memory_space<vmem>>, vector<16x200xbf16>
    %c0_1 = arith.constant 0 : index
    %c0_2 = arith.constant 0 : index
    %1 = vector.load %arg3[%c0_1, %c0_2] : memref<200x224xbf16, #tpu.memory_space<vmem>>, vector<200x224xbf16>
    %cst = arith.constant dense<0.000000e+00> : vector<16x224xf32>
    %2 = tpu.matmul %0, %1, %cst {dimension_numbers = #tpu.dot_dimension_numbers<[1], [0], [0], [1], [0, 0, 1, 1], [], []>} : vector<16x200xbf16>, vector<200x224xbf16>, vector<16x224xf32> -> vector<16x224xf32>
    %c0_3 = arith.constant 0 : index
    %c0_4 = arith.constant 0 : index
    %3 = vector.load %arg1[%c0_3, %c0_4] : memref<16x1xf32, #tpu.memory_space<vmem>>, vector<16x1xf32>
    %4 = vector.broadcast %3 : vector<16x1xf32> to vector<16x224xf32>
    %5 = arith.mulf %2, %4 : vector<16x224xf32>
    %c0_5 = arith.constant 0 : index
    %c0_6 = arith.constant 0 : index
    %6 = vector.load %arg2[%c0_5, %c0_6] : memref<16x1xf32, #tpu.memory_space<vmem>>, vector<16x1xf32>
    %7 = vector.broadcast %6 : vector<16x1xf32> to vector<16x224xf32>
    %8 = arith.addf %5, %7 : vector<16x224xf32>
    %cst_7 = arith.constant 0.000000e+00 : f32
    %9 = vector.broadcast %cst_7 : f32 to vector<16x224xf32>
    %10 = arith.maximumf %8, %9 : vector<16x224xf32>
    %11 = arith.truncf %10 : vector<16x224xf32> to vector<16x224xbf16>
    %c0_8 = arith.constant 0 : index
    %c0_9 = arith.constant 0 : index
    %12 = vector.load %arg4[%c0_8, %c0_9] : memref<16x224xbf16, #tpu.memory_space<vmem>>, vector<16x224xbf16>
    tpu.vector_store %arg4[%c0_8, %c0_9], %11 {strides = array<i32>} : memref<16x224xbf16, #tpu.memory_space<vmem>>, vector<16x224xbf16>,
    return
  }
}

module attributes {stable_mosaic.version = 11 : i64} {
  func.func @_fc_chain_kernel(%arg0: memref<2x1792xbf16, #tpu.memory_space<vmem>>, %arg1: memref<1792x128xbf16, #tpu.memory_space<vmem>>, %arg2: memref<1x128xf32, #tpu.memory_space<vmem>>, %arg3: memref<128x16xbf16, #tpu.memory_space<vmem>>, %arg4: memref<1x16xf32, #tpu.memory_space<vmem>>, %arg5: memref<16x128xbf16, #tpu.memory_space<vmem>>, %arg6: memref<1x128xf32, #tpu.memory_space<vmem>>, %arg7: memref<128x1792xbf16, #tpu.memory_space<vmem>>, %arg8: memref<1x1792xf32, #tpu.memory_space<vmem>>, %arg9: memref<2x16xf32, #tpu.memory_space<vmem>>, %arg10: memref<2x1792xbf16, #tpu.memory_space<vmem>>) attributes {dimension_semantics = [], scalar_prefetch = 0 : i64, scratch_operands = 0 : i64, tpu.core_type = #tpu.core_type<tc>} {
    %c0 = arith.constant 0 : index
    %c0_0 = arith.constant 0 : index
    %0 = vector.load %arg0[%c0, %c0_0] : memref<2x1792xbf16, #tpu.memory_space<vmem>>, vector<2x1792xbf16>
    %c0_1 = arith.constant 0 : index
    %c0_2 = arith.constant 0 : index
    %1 = vector.load %arg1[%c0_1, %c0_2] : memref<1792x128xbf16, #tpu.memory_space<vmem>>, vector<1792x128xbf16>
    %cst = arith.constant dense<0.000000e+00> : vector<2x128xf32>
    %2 = tpu.matmul %0, %1, %cst {dimension_numbers = #tpu.dot_dimension_numbers<[1], [0], [0], [1], [0, 0, 1, 1], [], []>} : vector<2x1792xbf16>, vector<1792x128xbf16>, vector<2x128xf32> -> vector<2x128xf32>
    %c0_3 = arith.constant 0 : index
    %c0_4 = arith.constant 0 : index
    %3 = vector.load %arg2[%c0_3, %c0_4] : memref<1x128xf32, #tpu.memory_space<vmem>>, vector<1x128xf32>
    %4 = vector.broadcast %3 : vector<1x128xf32> to vector<2x128xf32>
    %5 = arith.addf %2, %4 : vector<2x128xf32>
    %cst_5 = arith.constant 0.000000e+00 : f32
    %6 = vector.broadcast %cst_5 : f32 to vector<2x128xf32>
    %7 = arith.maximumf %5, %6 : vector<2x128xf32>
    %8 = arith.truncf %7 : vector<2x128xf32> to vector<2x128xbf16>
    %c0_6 = arith.constant 0 : index
    %c0_7 = arith.constant 0 : index
    %9 = vector.load %arg3[%c0_6, %c0_7] : memref<128x16xbf16, #tpu.memory_space<vmem>>, vector<128x16xbf16>
    %cst_8 = arith.constant dense<0.000000e+00> : vector<2x16xf32>
    %10 = tpu.matmul %8, %9, %cst_8 {dimension_numbers = #tpu.dot_dimension_numbers<[1], [0], [0], [1], [0, 0, 1, 1], [], []>} : vector<2x128xbf16>, vector<128x16xbf16>, vector<2x16xf32> -> vector<2x16xf32>
    %c0_9 = arith.constant 0 : index
    %c0_10 = arith.constant 0 : index
    %11 = vector.load %arg4[%c0_9, %c0_10] : memref<1x16xf32, #tpu.memory_space<vmem>>, vector<1x16xf32>
    %12 = vector.broadcast %11 : vector<1x16xf32> to vector<2x16xf32>
    %13 = arith.addf %10, %12 : vector<2x16xf32>
    %cst_11 = arith.constant 0.000000e+00 : f32
    %14 = vector.broadcast %cst_11 : f32 to vector<2x16xf32>
    %15 = arith.maximumf %13, %14 : vector<2x16xf32>
    %c0_12 = arith.constant 0 : index
    %c0_13 = arith.constant 0 : index
    %16 = vector.load %arg9[%c0_12, %c0_13] : memref<2x16xf32, #tpu.memory_space<vmem>>, vector<2x16xf32>
    tpu.vector_store %arg9[%c0_12, %c0_13], %15 {strides = array<i32>} : memref<2x16xf32, #tpu.memory_space<vmem>>, vector<2x16xf32>,
    %17 = arith.truncf %15 : vector<2x16xf32> to vector<2x16xbf16>
    %c0_14 = arith.constant 0 : index
    %c0_15 = arith.constant 0 : index
    %18 = vector.load %arg5[%c0_14, %c0_15] : memref<16x128xbf16, #tpu.memory_space<vmem>>, vector<16x128xbf16>
    %cst_16 = arith.constant dense<0.000000e+00> : vector<2x128xf32>
    %19 = tpu.matmul %17, %18, %cst_16 {dimension_numbers = #tpu.dot_dimension_numbers<[1], [0], [0], [1], [0, 0, 1, 1], [], []>} : vector<2x16xbf16>, vector<16x128xbf16>, vector<2x128xf32> -> vector<2x128xf32>
    %c0_17 = arith.constant 0 : index
    %c0_18 = arith.constant 0 : index
    %20 = vector.load %arg6[%c0_17, %c0_18] : memref<1x128xf32, #tpu.memory_space<vmem>>, vector<1x128xf32>
    %21 = vector.broadcast %20 : vector<1x128xf32> to vector<2x128xf32>
    %22 = arith.addf %19, %21 : vector<2x128xf32>
    %cst_19 = arith.constant 0.000000e+00 : f32
    %23 = vector.broadcast %cst_19 : f32 to vector<2x128xf32>
    %24 = arith.maximumf %22, %23 : vector<2x128xf32>
    %25 = arith.truncf %24 : vector<2x128xf32> to vector<2x128xbf16>
    %c0_20 = arith.constant 0 : index
    %c0_21 = arith.constant 0 : index
    %26 = vector.load %arg7[%c0_20, %c0_21] : memref<128x1792xbf16, #tpu.memory_space<vmem>>, vector<128x1792xbf16>
    %cst_22 = arith.constant dense<0.000000e+00> : vector<2x1792xf32>
    %27 = tpu.matmul %25, %26, %cst_22 {dimension_numbers = #tpu.dot_dimension_numbers<[1], [0], [0], [1], [0, 0, 1, 1], [], []>} : vector<2x128xbf16>, vector<128x1792xbf16>, vector<2x1792xf32> -> vector<2x1792xf32>
    %c0_23 = arith.constant 0 : index
    %c0_24 = arith.constant 0 : index
    %28 = vector.load %arg8[%c0_23, %c0_24] : memref<1x1792xf32, #tpu.memory_space<vmem>>, vector<1x1792xf32>
    %29 = vector.broadcast %28 : vector<1x1792xf32> to vector<2x1792xf32>
    %30 = arith.addf %27, %29 : vector<2x1792xf32>
    %cst_25 = arith.constant 0.000000e+00 : f32
    %31 = vector.broadcast %cst_25 : f32 to vector<2x1792xf32>
    %32 = arith.maximumf %30, %31 : vector<2x1792xf32>
    %33 = arith.truncf %32 : vector<2x1792xf32> to vector<2x1792xbf16>
    %c0_26 = arith.constant 0 : index
    %c0_27 = arith.constant 0 : index
    %34 = vector.load %arg10[%c0_26, %c0_27] : memref<2x1792xbf16, #tpu.memory_space<vmem>>, vector<2x1792xbf16>
    tpu.vector_store %arg10[%c0_26, %c0_27], %33 {strides = array<i32>} : memref<2x1792xbf16, #tpu.memory_space<vmem>>, vector<2x1792xbf16>,
    return
  }
}

module attributes {stable_mosaic.version = 11 : i64} {
  func.func @_mm_affine_relu_kernel(%arg0: memref<72x64xbf16, #tpu.memory_space<vmem>>, %arg1: memref<72x1xf32, #tpu.memory_space<vmem>>, %arg2: memref<72x1xf32, #tpu.memory_space<vmem>>, %arg3: memref<64x290xbf16, #tpu.memory_space<vmem>>, %arg4: memref<72x290xbf16, #tpu.memory_space<vmem>>) attributes {dimension_semantics = [], scalar_prefetch = 0 : i64, scratch_operands = 0 : i64, tpu.core_type = #tpu.core_type<tc>} {
    %c0 = arith.constant 0 : index
    %c0_0 = arith.constant 0 : index
    %0 = vector.load %arg0[%c0, %c0_0] : memref<72x64xbf16, #tpu.memory_space<vmem>>, vector<72x64xbf16>
    %c0_1 = arith.constant 0 : index
    %c0_2 = arith.constant 0 : index
    %1 = vector.load %arg3[%c0_1, %c0_2] : memref<64x290xbf16, #tpu.memory_space<vmem>>, vector<64x290xbf16>
    %cst = arith.constant dense<0.000000e+00> : vector<72x290xf32>
    %2 = tpu.matmul %0, %1, %cst {dimension_numbers = #tpu.dot_dimension_numbers<[1], [0], [0], [1], [0, 0, 1, 1], [], []>} : vector<72x64xbf16>, vector<64x290xbf16>, vector<72x290xf32> -> vector<72x290xf32>
    %c0_3 = arith.constant 0 : index
    %c0_4 = arith.constant 0 : index
    %3 = vector.load %arg1[%c0_3, %c0_4] : memref<72x1xf32, #tpu.memory_space<vmem>>, vector<72x1xf32>
    %4 = vector.broadcast %3 : vector<72x1xf32> to vector<72x290xf32>
    %5 = arith.mulf %2, %4 : vector<72x290xf32>
    %c0_5 = arith.constant 0 : index
    %c0_6 = arith.constant 0 : index
    %6 = vector.load %arg2[%c0_5, %c0_6] : memref<72x1xf32, #tpu.memory_space<vmem>>, vector<72x1xf32>
    %7 = vector.broadcast %6 : vector<72x1xf32> to vector<72x290xf32>
    %8 = arith.addf %5, %7 : vector<72x290xf32>
    %cst_7 = arith.constant 0.000000e+00 : f32
    %9 = vector.broadcast %cst_7 : f32 to vector<72x290xf32>
    %10 = arith.maximumf %8, %9 : vector<72x290xf32>
    %11 = arith.truncf %10 : vector<72x290xf32> to vector<72x290xbf16>
    %c0_8 = arith.constant 0 : index
    %c0_9 = arith.constant 0 : index
    %12 = vector.load %arg4[%c0_8, %c0_9] : memref<72x290xbf16, #tpu.memory_space<vmem>>, vector<72x290xbf16>
    tpu.vector_store %arg4[%c0_8, %c0_9], %11 {strides = array<i32>} : memref<72x290xbf16, #tpu.memory_space<vmem>>, vector<72x290xbf16>,
    return
  }
}

module attributes {stable_mosaic.version = 11 : i64} {
  func.func @_mm_affine_relu_kernel(%arg0: memref<9x32xbf16, #tpu.memory_space<vmem>>, %arg1: memref<9x1xf32, #tpu.memory_space<vmem>>, %arg2: memref<9x1xf32, #tpu.memory_space<vmem>>, %arg3: memref<32x2408xbf16, #tpu.memory_space<vmem>>, %arg4: memref<9x2408xbf16, #tpu.memory_space<vmem>>) attributes {dimension_semantics = [], scalar_prefetch = 0 : i64, scratch_operands = 0 : i64, tpu.core_type = #tpu.core_type<tc>} {
    %c0 = arith.constant 0 : index
    %c0_0 = arith.constant 0 : index
    %0 = vector.load %arg0[%c0, %c0_0] : memref<9x32xbf16, #tpu.memory_space<vmem>>, vector<9x32xbf16>
    %c0_1 = arith.constant 0 : index
    %c0_2 = arith.constant 0 : index
    %1 = vector.load %arg3[%c0_1, %c0_2] : memref<32x2408xbf16, #tpu.memory_space<vmem>>, vector<32x2408xbf16>
    %cst = arith.constant dense<0.000000e+00> : vector<9x2408xf32>
    %2 = tpu.matmul %0, %1, %cst {dimension_numbers = #tpu.dot_dimension_numbers<[1], [0], [0], [1], [0, 0, 1, 1], [], []>} : vector<9x32xbf16>, vector<32x2408xbf16>, vector<9x2408xf32> -> vector<9x2408xf32>
    %c0_3 = arith.constant 0 : index
    %c0_4 = arith.constant 0 : index
    %3 = vector.load %arg1[%c0_3, %c0_4] : memref<9x1xf32, #tpu.memory_space<vmem>>, vector<9x1xf32>
    %4 = vector.broadcast %3 : vector<9x1xf32> to vector<9x2408xf32>
    %5 = arith.mulf %2, %4 : vector<9x2408xf32>
    %c0_5 = arith.constant 0 : index
    %c0_6 = arith.constant 0 : index
    %6 = vector.load %arg2[%c0_5, %c0_6] : memref<9x1xf32, #tpu.memory_space<vmem>>, vector<9x1xf32>
    %7 = vector.broadcast %6 : vector<9x1xf32> to vector<9x2408xf32>
    %8 = arith.addf %5, %7 : vector<9x2408xf32>
    %cst_7 = arith.constant 0.000000e+00 : f32
    %9 = vector.broadcast %cst_7 : f32 to vector<9x2408xf32>
    %10 = arith.maximumf %8, %9 : vector<9x2408xf32>
    %11 = arith.truncf %10 : vector<9x2408xf32> to vector<9x2408xbf16>
    %c0_8 = arith.constant 0 : index
    %c0_9 = arith.constant 0 : index
    %12 = vector.load %arg4[%c0_8, %c0_9] : memref<9x2408xbf16, #tpu.memory_space<vmem>>, vector<9x2408xbf16>
    tpu.vector_store %arg4[%c0_8, %c0_9], %11 {strides = array<i32>} : memref<9x2408xbf16, #tpu.memory_space<vmem>>, vector<9x2408xbf16>,
    return
  }
}

</mosaic_0001>

<bundles_post_ra>
// kernel: ae_forward.5
= control target key start
LH: loop header
LB: loop body
LE: loop exit
PB: predicated region body
PF: predicated region fallthrough
CT: control target
= control target key end

     0   :  { %vm199_vm0 = vcmask 1043456   ;;  %vm200_vm1 = vcmask 1044480   ;;  %v776_v3 = vmov 65535   ;;  %v777_v5 = vmov 0   ;;  %s1015_s3 = inlined_call_operand.vmem [shape: bf16[25,2016], index: 3, kind: input, shape index: {}]   ;;  %s1016_s0 = inlined_call_operand.vmem [shape: bf16[8,25], index: 0, kind: input, shape index: {}]   ;;  %s1017_s1 = inlined_call_operand.vmem [shape: f32[8,1], index: 1, kind: input, shape index: {}]   ;;  %s1018_s2 = inlined_call_operand.vmem [shape: f32[8,1], index: 2, kind: input, shape index: {}]   ;;  %s1019_s4 = inlined_call_operand.vmem [shape: bf16[8,2016], index: 4, kind: output, shape index: {}]  }
   0x1   :  { %v19_v0 = vld [vmem:[%s1015_s3] sm:$0xff]  ;;  %v20_v2 = vld [vmem:[%s1015_s3 + $0x8] sm:$0xff]  ;;  %v201_v4 = vsel %vm199_vm0, 4294967295, %v776_v3  ;;  %283 = vmatprep.mubr.bf16.mxu0 %v777_v5  ;;  %324 = vmatprep.mubr.bf16.mxu1 %v777_v5  ;;  %v21_v20 = vld [vmem:[%s1015_s3 + $0x10] sm:$0xff]  ;;  %vm195_vm2 = vcmask 203776   ;;  %vm710_vm3 = vcmask 785412  }
   0x2   :  { %v27_v1 = vld [vmem:[%s1015_s3 + $0x40] sm:$0xff]  ;;  %v28_v7 = vld [vmem:[%s1015_s3 + $0x48] sm:$0xff]  ;;  %v824_v11 = vsel %vm200_vm1, %v201_v4, 0  ;;  %775 = vset.pattern.permute.xlu0 %v777_v5  ;;  %v29_v21 = vld [vmem:[%s1015_s3 + $0x50] sm:$0xff] }
   0x3   :  { %v718_v6 = vcombine.high %v19_v0, %v27_v1  ;;  %v717_v8 = vcombine.low %v19_v0, %v27_v1  ;;  %v35_v9 = vld [vmem:[%s1015_s3 + $0x80] sm:$0xff]  ;;  %v720_v12 = vcombine.high %v20_v2, %v28_v7  ;;  %v719_v13 = vcombine.low %v20_v2, %v28_v7  ;;  %v36_v15 = vld [vmem:[%s1015_s3 + $0x88] sm:$0xff]  ;;  %v22_v22 = vld [vmem:[%s1015_s3 + $0x18] sm:$0xff] }
   0x4   :  { %v43_v10 = vld [vmem:[%s1015_s3 + $0xc0] sm:$0x11]  ;;  %v44_v16 = vld [vmem:[%s1015_s3 + $0xc8] sm:$0x11]  ;;  %v30_v25 = vld [vmem:[%s1015_s3 + $0x58] sm:$0xff]  ;;  %v722_v30 = vcombine.high %v21_v20, %v29_v21  ;;  %v721_v37 = vcombine.low %v21_v20, %v29_v21 }
   0x5   :  { %v734_v14 = vcombine.high %v35_v9, %v43_v10  ;;  %v733_v17 = vcombine.low %v35_v9, %v43_v10  ;;  %251 = vmatprep.subr.bf16.mxu0 %v718_v6  ;;  %v736_v18 = vcombine.high %v36_v15, %v44_v16  ;;  %v735_v19 = vcombine.low %v36_v15, %v44_v16  ;;  %v37_v26 = vld [vmem:[%s1015_s3 + $0x90] sm:$0xff]  ;;  %v38_v31 = vld [vmem:[%s1015_s3 + $0x98] sm:$0xff]  ;;  %v864_v36 = vld [vmem:[%s1016_s0] sm:$0xf] }
   0x6   :  { %292 = vmatprep.subr.bf16.mxu1 %v720_v12  ;;  %252 = vmatpush1.bf16.msra.mxu0 %v717_v8  ;;  %v45_v27 = vld [vmem:[%s1015_s3 + $0xd0] sm:$0x11]  ;;  %v46_v32 = vld [vmem:[%s1015_s3 + $0xd8] sm:$0x11]  ;;  %v724_v33 = vcombine.high %v22_v22, %v30_v25  ;;  %v723_v39 = vcombine.low %v22_v22, %v30_v25  ;;  %v23_v42 = vld [vmem:[%s1015_s3 + $0x20] sm:$0xff] }
   0x7   :  { %v207_v23 = vand.u32 %v734_v14, %v824_v11  ;;  %v204_v24 = vand.u32 %v733_v17, %v824_v11  ;;  %293 = vmatpush1.bf16.msra.mxu1 %v719_v13  ;;  %v213_v28 = vand.u32 %v736_v18, %v824_v11  ;;  %v210_v29 = vand.u32 %v735_v19, %v824_v11  ;;  %v31_v43 = vld [vmem:[%s1015_s3 + $0x60] sm:$0xff]  ;;  %v24_v45 = vld [vmem:[%s1015_s3 + $0x28] sm:$0xff]  ;;  %v25_v0 = vld [vmem:[%s1015_s3 + $0x30] sm:$0xff] }
   0x8   :  { %v738_v34 = vcombine.high %v37_v26, %v45_v27  ;;  %v740_v35 = vcombine.high %v38_v31, %v46_v32  ;;  %v737_v38 = vcombine.low %v37_v26, %v45_v27  ;;  %v739_v41 = vcombine.low %v38_v31, %v46_v32  ;;  %v39_v46 = vld [vmem:[%s1015_s3 + $0xa0] sm:$0xff]  ;;  %v32_v48 = vld [vmem:[%s1015_s3 + $0x68] sm:$0xff]  ;;  %v33_v1 = vld [vmem:[%s1015_s3 + $0x70] sm:$0xff] }
   0x9   :  { %253 = vmatprep.subr.bf16.mxu0 %v207_v23  ;;  %294 = vmatprep.subr.bf16.mxu1 %v213_v28  ;;  %v47_v47 = vld [vmem:[%s1015_s3 + $0xe0] sm:$0x11]  ;;  %v40_v49 = vld [vmem:[%s1015_s3 + $0xa8] sm:$0xff]  ;;  %v726_v54 = vcombine.high %v23_v42, %v31_v43  ;;  %v728_v56 = vcombine.high %v24_v45, %v32_v48  ;;  %v725_v58 = vcombine.low %v23_v42, %v31_v43  ;;  %v26_v3 = vld [vmem:[%s1015_s3 + $0x38] sm:$0xff] }
   0xa   :  { %254 = vmatpush1.bf16.msra.mxu0 %v204_v24  ;;  %v219_v40 = vand.u32 %v738_v34, %v824_v11  ;;  %v225_v44 = vand.u32 %v740_v35, %v824_v11  ;;  %v48_v50 = vld [vmem:[%s1015_s3 + $0xe8] sm:$0x11]  ;;  %v216_v51 = vand.u32 %v737_v38, %v824_v11  ;;  %v579_v52 = vld [vmem:[%s1017_s1] sm:$0xff]  ;;  %v222_v53 = vand.u32 %v739_v41, %v824_v11  ;;  %v41_v4 = vld [vmem:[%s1015_s3 + $0xb0] sm:$0xff] }
   0xb   :  { %295 = vmatpush1.bf16.msra.mxu1 %v210_v29  ;;  %333 = vmatprep.subr.bf16.mxu0 %v722_v30  ;;  %v742_v55 = vcombine.high %v39_v46, %v47_v47  ;;  %v744_v57 = vcombine.high %v40_v49, %v48_v50  ;;  %v741_v59 = vcombine.low %v39_v46, %v47_v47  ;;  %v601_v60 = vld [vmem:[%s1018_s2] sm:$0xff]  ;;  %v49_v6 = vld [vmem:[%s1015_s3 + $0xf0] sm:$0x11]  ;;  %v34_v7 = vld [vmem:[%s1015_s3 + $0x78] sm:$0xff] }
   0xc   :  { %374 = vmatprep.subr.bf16.mxu1 %v724_v33  ;;  %582 = vperm.xlu0 %775, %v579_v52   ;;  %v727_v61 = vcombine.low %v24_v45, %v32_v48  ;;  %v743_v63 = vcombine.low %v40_v49, %v48_v50  ;;  %v42_v8 = vld [vmem:[%s1015_s3 + $0xb8] sm:$0xff]  ;;  %v730_v13 = vcombine.high %v25_v0, %v33_v1  ;;  %vm711_vm4 = vmor %vm710_vm3, %vm199_vm0 }
   0xd   :  { %749 = vmatmul.mubr.msk.bf16.vlgmr.msra.gmra.mrb[0].mxu0 %vm195_vm2, %v864_v36  ;;  %v231_v62 = vand.u32 %v742_v55, %v824_v11  ;;  %v237_v2 = vand.u32 %v744_v57, %v824_v11  ;;  %v50_v9 = vld [vmem:[%s1015_s3 + $0xf8] sm:$0x11]  ;;  %v228_v10 = vand.u32 %v741_v59, %v824_v11  ;;  %v746_v14 = vcombine.high %v41_v4, %v49_v6 }
   0xe   :  { %750 = vmatmul.mubr.msk.bf16.vlgmr.msra.gmra.mrb[0].mxu1 %vm195_vm2, %v864_v36  ;;  %334 = vmatpush1.bf16.msra.mxu0 %v721_v37  ;;  %v234_v12 = vand.u32 %v743_v63, %v824_v11  ;;  %v732_v15 = vcombine.high %v26_v3, %v34_v7  ;;  %v748_v16 = vcombine.high %v42_v8, %v50_v9 }
   0xf   :  { %375 = vmatpush1.bf16.msra.mxu1 %v723_v39  ;;  %335 = vmatprep.subr.bf16.mxu0 %v219_v40  ;;  %v729_v17 = vcombine.low %v25_v0, %v33_v1  ;;  %v745_v18 = vcombine.low %v41_v4, %v49_v6  ;;  %v731_v19 = vcombine.low %v26_v3, %v34_v7 }
  0x10   :  { %376 = vmatprep.subr.bf16.mxu1 %v225_v44  ;;  %365 = vmatprep.mubr.bf16.mxu0 %v777_v5  ;;  %v243_v20 = vand.u32 %v746_v14, %v824_v11  ;;  %v747_v21 = vcombine.low %v42_v8, %v50_v9  ;;  %v249_v22 = vand.u32 %v748_v16, %v824_v11 }
  0x11   :  { %406 = vmatprep.mubr.bf16.mxu1 %v777_v5  ;;  %604 = vperm.xlu0 %775, %v601_v60   ;;  %v240_v23 = vand.u32 %v745_v18, %v824_v11 }
  0x12   :  { %336 = vmatpush1.bf16.msra.mxu0 %v216_v51  ;;  %v246_v24 = vand.u32 %v747_v21, %v824_v11 }
  0x13   :  { %377 = vmatpush1.bf16.msra.mxu1 %v222_v53  ;;  %415 = vmatprep.subr.bf16.mxu0 %v726_v54 }
  0x14   :  { %456 = vmatprep.subr.bf16.mxu1 %v728_v56 }
  0x15   :  { %751 = vmatmul.mubr.msk.bf16.vlgmr.msra.gmra.mrb[4].mxu0 %vm195_vm2, %v864_v36 }
  0x16   :  { %752 = vmatmul.mubr.msk.bf16.vlgmr.msra.gmra.mrb[4].mxu1 %vm195_vm2, %v864_v36  ;;  %416 = vmatpush1.bf16.msra.mxu0 %v725_v58 }
  0x17   :  { %457 = vmatpush1.bf16.msra.mxu1 %v727_v61  ;;  %417 = vmatprep.subr.bf16.mxu0 %v231_v62 }
  0x18   :  { %458 = vmatprep.subr.bf16.mxu1 %v237_v2  ;;  %447 = vmatprep.mubr.bf16.mxu0 %v777_v5 }
  0x19   :  { %488 = vmatprep.mubr.bf16.mxu1 %v777_v5 }
  0x1a   :  { %418 = vmatpush1.bf16.msra.mxu0 %v228_v10 }
  0x1b   :  { %459 = vmatpush1.bf16.msra.mxu1 %v234_v12  ;;  %497 = vmatprep.subr.bf16.mxu0 %v730_v13 }
  0x1c   :  { %538 = vmatprep.subr.bf16.mxu1 %v732_v15 }
  0x1d   :  { %753 = vmatmul.mubr.msk.bf16.vlgmr.msra.gmra.mrb[8].mxu0 %vm195_vm2, %v864_v36 }
  0x1e   :  { %754 = vmatmul.mubr.msk.bf16.vlgmr.msra.gmra.mrb[8].mxu1 %vm195_vm2, %v864_v36  ;;  %498 = vmatpush1.bf16.msra.mxu0 %v729_v17 }
  0x1f   :  { %539 = vmatpush1.bf16.msra.mxu1 %v731_v19  ;;  %499 = vmatprep.subr.bf16.mxu0 %v243_v20 }
  0x20   :  { %540 = vmatprep.subr.bf16.mxu1 %v249_v22  ;;  %529 = vmatprep.mubr.bf16.mxu0 %v777_v5 }
  0x21   :  { %570 = vmatprep.mubr.bf16.mxu1 %v777_v5 }
  0x22   :  { %500 = vmatpush1.bf16.msra.mxu0 %v240_v23 }
  0x23   :  { %541 = vmatpush1.bf16.msra.mxu1 %v246_v24 }
  0x25   :  { %755 = vmatmul.mubr.msk.bf16.vlgmr.msra.gmra.mrb[12].mxu0 %vm195_vm2, %v864_v36 }
  0x26   :  { %756 = vmatmul.mubr.msk.bf16.vlgmr.msra.gmra.mrb[12].mxu1 %vm195_vm2, %v864_v36 }
  0x8b   :  { %v954_v25 = vpop.permute.xlu0 %582 }
  0x90   :  { %v956_v27 = vpop.permute.xlu0 %604 }
  0xe0   :  { %v285_v26 = vpop.f32.mrb[0].mxu0 }
  0xe1   :  { %v585_v11 = vmul.f32 %v954_v25, %v285_v26  ;;  %v326_v28 = vpop.f32.mrb[0].mxu1  ;;  %v287_v29 = vpop.f32.mrb[1].mxu0 }
  0xe2   :  { %v587_v30 = vmul.f32 %v954_v25, %v326_v28  ;;  %v586_v5 = vmul.f32 %v954_v25, %v287_v29  ;;  %v328_v31 = vpop.f32.mrb[1].mxu1  ;;  %v289_v32 = vpop.f32.mrb[2].mxu0 }
  0xe3   :  { %v588_v33 = vmul.f32 %v954_v25, %v328_v31  ;;  %v330_v34 = vpop.f32.mrb[2].mxu1  ;;  %v290_v35 = vpop.f32.mrb[3].mxu0  ;;  %v607_v36 = vadd.f32 %v956_v27, %v585_v11 }
  0xe4   :  { %v331_v37 = vpop.f32.mrb[3].mxu1  ;;  %v608_v38 = vadd.f32 %v956_v27, %v586_v5  ;;  %v609_v39 = vadd.f32 %v956_v27, %v587_v30 }
  0xe5   :  { %v610_v40 = vadd.f32 %v956_v27, %v588_v33  ;;  %v623_v41 = vmax.f32 %v607_v36, 0.0 }
  0xe6   :  { %v624_v42 = vmax.f32 %v608_v38, 0.0  ;;  %v625_v43 = vmax.f32 %v609_v39, 0.0 }
  0xe7   :  { %v626_v44 = vmax.f32 %v610_v40, 0.0 }
  0xe8   :  { %v367_v45 = vpop.f32.mrb[4].mxu0  ;;  %v765_v46 = vpack.c.bf16 %v624_v42, %v623_v41 }
  0xe9   :  { %v589_v47 = vmul.f32 %v954_v25, %v367_v45  ;;  %v408_v48 = vpop.f32.mrb[4].mxu1  ;;  %v369_v49 = vpop.f32.mrb[5].mxu0  ;;  %v766_v50 = vpack.c.bf16 %v626_v44, %v625_v43 }
  0xea   :  { %v591_v51 = vmul.f32 %v954_v25, %v408_v48  ;;  %v590_v52 = vmul.f32 %v954_v25, %v369_v49  ;;  %703 = vst [vmem:[%s1019_s4] sm:$0xff] %v765_v46  ;;  %v410_v53 = vpop.f32.mrb[5].mxu1  ;;  %v371_v54 = vpop.f32.mrb[6].mxu0 }
  0xeb   :  { %v611_v55 = vadd.f32 %v956_v27, %v589_v47  ;;  %704 = vst [vmem:[%s1019_s4 + $0x8] sm:$0xff] %v766_v50  ;;  %v592_v56 = vmul.f32 %v954_v25, %v410_v53  ;;  %v412_v57 = vpop.f32.mrb[6].mxu1  ;;  %v372_v58 = vpop.f32.mrb[7].mxu0 }
  0xec   :  { %v613_v59 = vadd.f32 %v956_v27, %v591_v51  ;;  %v612_v60 = vadd.f32 %v956_v27, %v590_v52  ;;  %v413_v61 = vpop.f32.mrb[7].mxu1 }
  0xed   :  { %v627_v62 = vmax.f32 %v611_v55, 0.0  ;;  %v614_v63 = vadd.f32 %v956_v27, %v592_v56 }
  0xee   :  { %v629_v0 = vmax.f32 %v613_v59, 0.0  ;;  %v628_v1 = vmax.f32 %v612_v60, 0.0 }
  0xef   :  { %v630_v2 = vmax.f32 %v614_v63, 0.0 }
  0xf0   :  { %v767_v3 = vpack.c.bf16 %v628_v1, %v627_v62  ;;  %v449_v4 = vpop.f32.mrb[8].mxu0 }
  0xf1   :  { %v768_v6 = vpack.c.bf16 %v630_v2, %v629_v0  ;;  %v593_v7 = vmul.f32 %v954_v25, %v449_v4  ;;  %v490_v8 = vpop.f32.mrb[8].mxu1  ;;  %v451_v9 = vpop.f32.mrb[9].mxu0 }
  0xf2   :  { %705 = vst [vmem:[%s1019_s4 + $0x10] sm:$0xff] %v767_v3  ;;  %v595_v10 = vmul.f32 %v954_v25, %v490_v8  ;;  %v594_v12 = vmul.f32 %v954_v25, %v451_v9  ;;  %v492_v13 = vpop.f32.mrb[9].mxu1  ;;  %v453_v14 = vpop.f32.mrb[10].mxu0 }
  0xf3   :  { %706 = vst [vmem:[%s1019_s4 + $0x18] sm:$0xff] %v768_v6  ;;  %v615_v15 = vadd.f32 %v956_v27, %v593_v7  ;;  %v596_v16 = vmul.f32 %v954_v25, %v492_v13  ;;  %v494_v17 = vpop.f32.mrb[10].mxu1  ;;  %v454_v18 = vpop.f32.mrb[11].mxu0 }
  0xf4   :  { %v617_v19 = vadd.f32 %v956_v27, %v595_v10  ;;  %v616_v20 = vadd.f32 %v956_v27, %v594_v12  ;;  %v495_v21 = vpop.f32.mrb[11].mxu1 }
  0xf5   :  { %v631_v22 = vmax.f32 %v615_v15, 0.0  ;;  %v618_v23 = vadd.f32 %v956_v27, %v596_v16 }
  0xf6   :  { %v633_v24 = vmax.f32 %v617_v19, 0.0  ;;  %v632_v26 = vmax.f32 %v616_v20, 0.0 }
  0xf7   :  { %v634_v11 = vmax.f32 %v618_v23, 0.0 }
  0xf8   :  { %v769_v28 = vpack.c.bf16 %v632_v26, %v631_v22  ;;  %v531_v29 = vpop.f32.mrb[12].mxu0 }
  0xf9   :  { %v770_v30 = vpack.c.bf16 %v634_v11, %v633_v24  ;;  %v597_v5 = vmul.f32 %v954_v25, %v531_v29  ;;  %v572_v31 = vpop.f32.mrb[12].mxu1  ;;  %v533_v32 = vpop.f32.mrb[13].mxu0 }
  0xfa   :  { %707 = vst [vmem:[%s1019_s4 + $0x20] sm:$0xff] %v769_v28  ;;  %v599_v33 = vmul.f32 %v954_v25, %v572_v31  ;;  %v598_v34 = vmul.f32 %v954_v25, %v533_v32  ;;  %v574_v35 = vpop.f32.mrb[13].mxu1  ;;  %v535_v36 = vpop.f32.mrb[14].mxu0 }
  0xfb   :  { %708 = vst [vmem:[%s1019_s4 + $0x28] sm:$0xff] %v770_v30  ;;  %v619_v37 = vadd.f32 %v956_v27, %v597_v5  ;;  %v600_v38 = vmul.f32 %v954_v25, %v574_v35  ;;  %v576_v39 = vpop.f32.mrb[14].mxu1  ;;  %v536_v40 = vpop.f32.mrb[15].mxu0 }
  0xfc   :  { %v621_v41 = vadd.f32 %v956_v27, %v599_v33  ;;  %v620_v42 = vadd.f32 %v956_v27, %v598_v34  ;;  %v577_v43 = vpop.f32.mrb[15].mxu1 }
  0xfd   :  { %v635_v44 = vmax.f32 %v619_v37, 0.0  ;;  %v622_v45 = vadd.f32 %v956_v27, %v600_v38 }
  0xfe   :  { %v637_v46 = vmax.f32 %v621_v41, 0.0  ;;  %v636_v47 = vmax.f32 %v620_v42, 0.0 }
  0xff   :  { %v638_v48 = vmax.f32 %v622_v45, 0.0 }
 0x100   :  { %v771_v49 = vpack.c.bf16 %v636_v47, %v635_v44 }
 0x101   :  { %v772_v50 = vpack.c.bf16 %v638_v48, %v637_v46 }
 0x102   :  { %709 = vst [vmem:[%s1019_s4 + $0x30] sm:$0xff] %v771_v49 }
 0x103   :  { %712 = vst.msk [vmem:[%s1019_s4 + $0x38] sm:$0xff] %vm711_vm4, %v772_v50 }

// kernel: ae_forward.6
= control target key start
LH: loop header
LB: loop body
LE: loop exit
PB: predicated region body
PF: predicated region fallthrough
CT: control target
= control target key end

     0   :  { %v367_v1 = vmov 0   ;;  %vm179_vm0 = vcmask 588800   ;;  %vm183_vm1 = vcmask 1043456   ;;  %vm281_vm2 = vcmask 785412   ;;  %s495_s3 = inlined_call_operand.vmem [shape: bf16[200,224], index: 3, kind: input, shape index: {}]   ;;  %s496_s0 = inlined_call_operand.vmem [shape: bf16[16,200], index: 0, kind: input, shape index: {}]   ;;  %s497_s1 = inlined_call_operand.vmem [shape: f32[16,1], index: 1, kind: input, shape index: {}]   ;;  %s498_s2 = inlined_call_operand.vmem [shape: f32[16,1], index: 2, kind: input, shape index: {}]   ;;  %s499_s4 = inlined_call_operand.vmem [shape: bf16[16,224], index: 4, kind: output, shape index: {}]  }
   0x1   :  { %v326_v0 = vld [vmem:[%s495_s3 + $0x4] ss:$8 sps:$4 sm:$0xff]   ;;  %324 = vset.pattern.permute.xlu0 %v367_v1  ;;  %325 = vset.pattern.permute.xlu1 %v367_v1  ;;  %v328_v2 = vld [vmem:[%s495_s3] ss:$8 sps:$4 sm:$0xff]   ;;  %v329_v3 = vld [vmem:[%s495_s3 + $0x14] ss:$8 sps:$4 sm:$0xff]  }
   0x2   :  { %190 = vmatprep.subr.bf16.mxu0 %v326_v0  ;;  %v331_v4 = vld [vmem:[%s495_s3 + $0x10] ss:$8 sps:$4 sm:$0xff]   ;;  %v332_v5 = vld [vmem:[%s495_s3 + $0x24] ss:$8 sps:$4 sm:$0xff]   ;;  %v334_v6 = vld [vmem:[%s495_s3 + $0x20] ss:$8 sps:$4 sm:$0xff]  }
   0x3   :  { %191 = vmatpush1.bf16.msra.mxu0 %v328_v2  ;;  %v335_v7 = vld [vmem:[%s495_s3 + $0x34] ss:$8 sps:$4 sm:$0xff]   ;;  %v337_v8 = vld [vmem:[%s495_s3 + $0x30] ss:$8 sps:$4 sm:$0xff]   ;;  %v338_v9 = vld [vmem:[%s495_s3 + $0x44] ss:$8 sps:$4 sm:$0xff]  }
   0x4   :  { %192 = vmatprep.subr.bf16.mxu0 %v329_v3  ;;  %v340_v10 = vld [vmem:[%s495_s3 + $0x40] ss:$8 sps:$4 sm:$0xff]   ;;  %v341_v11 = vld [vmem:[%s495_s3 + $0x54] ss:$8 sps:$4 sm:$0xff]   ;;  %v366_v12 = vld [vmem:[%s496_s0 + $0x4] ss:$8 sps:$4 sm:$0xff]  }
   0x5   :  { %v233_v13 = vld [vmem:[%s497_s1] sm:$0xff]  ;;  %v343_v15 = vld [vmem:[%s495_s3 + $0x50] ss:$8 sps:$4 sm:$0xff]   ;;  %318 = vmatprep.mubr.msk.bf16.mxu0 %vm179_vm0, %v366_v12  ;;  %v234_v17 = vld [vmem:[%s497_s1 + $0x8] sm:$0xff] }
   0x6   :  { %v249_v14 = vld [vmem:[%s498_s2] sm:$0xff]  ;;  %237 = vperm.xlu0 %324, %v233_v13   ;;  %v250_v18 = vld [vmem:[%s498_s2 + $0x8] sm:$0xff]  ;;  %v347_v20 = vld [vmem:[%s495_s3 + $0x74] ss:$8 sps:$4 sm:$0xff]  }
   0x7   :  { %193 = vmatpush1.bf16.msra.mxu0 %v331_v4  ;;  %v344_v16 = vld [vmem:[%s495_s3 + $0x64] ss:$8 sps:$4 sm:$0xff]   ;;  %253 = vperm.xlu1 %325, %v249_v14   ;;  %v346_v19 = vld [vmem:[%s495_s3 + $0x60] ss:$8 sps:$4 sm:$0xff]   ;;  %v349_v21 = vld [vmem:[%s495_s3 + $0x70] ss:$8 sps:$4 sm:$0xff]  }
   0x8   :  { %194 = vmatprep.subr.bf16.mxu0 %v332_v5  ;;  %v350_v22 = vld [vmem:[%s495_s3 + $0x84] ss:$8 sps:$4 sm:$0xff]   ;;  %v352_v23 = vld [vmem:[%s495_s3 + $0x80] ss:$8 sps:$4 sm:$0xff]   ;;  %v353_v24 = vld [vmem:[%s495_s3 + $0x94] ss:$8 sps:$4 sm:$0xff]  }
   0x9   :  { %v355_v25 = vld [vmem:[%s495_s3 + $0x90] ss:$8 sps:$4 sm:$0xff]   ;;  %v356_v26 = vld [vmem:[%s495_s3 + $0xa4] ss:$8 sps:$4 sm:$0xff]   ;;  %v358_v27 = vld [vmem:[%s495_s3 + $0xa0] ss:$8 sps:$4 sm:$0xff]  }
   0xa   :  { %242 = vperm.xlu0 %324, %v234_v17   ;;  %v359_v28 = vld [vmem:[%s495_s3 + $0xb4] ss:$8 sps:$4 sm:$0xff]   ;;  %v44_v29 = vld [vmem:[%s495_s3 + $0xc0] sm:$0xff]  ;;  %v361_v30 = vld [vmem:[%s495_s3 + $0xb0] ss:$8 sps:$4 sm:$0xff]  }
   0xb   :  { %195 = vmatpush1.bf16.msra.mxu0 %v334_v6  ;;  %258 = vperm.xlu1 %325, %v250_v18   ;;  %v316_v31 = vcombine.high %v44_v29, %v44_v29  ;;  %v315_v32 = vcombine.low %v44_v29, %v44_v29  ;;  %v364_v34 = vld [vmem:[%s496_s0] ss:$8 sps:$4 sm:$0xff]   ;;  %vm282_vm3 = vmor %vm281_vm2, %vm183_vm1 }
   0xc   :  { %196 = vmatprep.subr.bf16.mxu0 %v335_v7 }
   0xd   :  { %v185_v33 = vsel %vm183_vm1, %v315_v32, 0 }
   0xf   :  { %197 = vmatpush1.bf16.msra.mxu0 %v337_v8 }
  0x10   :  { %198 = vmatprep.subr.bf16.mxu0 %v338_v9 }
  0x13   :  { %199 = vmatpush1.bf16.msra.mxu0 %v340_v10 }
  0x14   :  { %200 = vmatprep.subr.bf16.mxu0 %v341_v11 }
  0x17   :  { %201 = vmatpush1.bf16.msra.mxu0 %v343_v15 }
  0x18   :  { %202 = vmatprep.subr.bf16.mxu0 %v344_v16 }
  0x1b   :  { %203 = vmatpush1.bf16.msra.mxu0 %v346_v19 }
  0x1c   :  { %204 = vmatprep.subr.bf16.mxu0 %v347_v20 }
  0x1f   :  { %205 = vmatpush1.bf16.msra.mxu0 %v349_v21 }
  0x20   :  { %206 = vmatprep.subr.bf16.mxu0 %v350_v22 }
  0x23   :  { %207 = vmatpush1.bf16.msra.mxu0 %v352_v23 }
  0x24   :  { %208 = vmatprep.subr.bf16.mxu0 %v353_v24 }
  0x27   :  { %209 = vmatpush1.bf16.msra.mxu0 %v355_v25 }
  0x28   :  { %210 = vmatprep.subr.bf16.mxu0 %v356_v26 }
  0x2b   :  { %211 = vmatpush1.bf16.msra.mxu0 %v358_v27 }
  0x2c   :  { %212 = vmatprep.subr.bf16.mxu0 %v359_v28 }
  0x2f   :  { %213 = vmatpush1.bf16.msra.mxu0 %v361_v30 }
  0x30   :  { %317 = vmatprep.subr.msk.bf16.mxu0 %vm183_vm1, %v316_v31 }
  0x33   :  { %215 = vmatpush1.bf16.msra.mxu0 %v185_v33 }
  0x36   :  { %223 = vmatmul.mubr.bf16.vlgmr.msra.gmra.mrb[0].mxu0 %v364_v34 }
  0x85   :  { %v238_v35 = vpop.permute.xlu0 %237 }
  0x86   :  { %v254_v36 = vpop.permute.xlu1 %253 }
  0x89   :  { %v243_v40 = vpop.permute.xlu0 %242 }
  0x8a   :  { %v259_v46 = vpop.permute.xlu1 %258 }
 0x109   :  { %v224_v37 = vpop.f32.mrb[0].mxu0 }
 0x10a   :  { %v245_v38 = vmul.f32 %v238_v35, %v224_v37  ;;  %v226_v39 = vpop.f32.mrb[1].mxu0 }
 0x10b   :  { %v246_v41 = vmul.f32 %v238_v35, %v226_v39  ;;  %v228_v42 = vpop.f32.mrb[2].mxu0 }
 0x10c   :  { %v261_v43 = vadd.f32 %v254_v36, %v245_v38  ;;  %v247_v44 = vmul.f32 %v243_v40, %v228_v42  ;;  %v230_v45 = vpop.f32.mrb[3].mxu0 }
 0x10d   :  { %v262_v47 = vadd.f32 %v254_v36, %v246_v41  ;;  %v248_v48 = vmul.f32 %v243_v40, %v230_v45 }
 0x10e   :  { %v265_v49 = vmax.f32 %v261_v43, 0.0  ;;  %v263_v50 = vadd.f32 %v259_v46, %v247_v44 }
 0x10f   :  { %v266_v51 = vmax.f32 %v262_v47, 0.0  ;;  %v264_v52 = vadd.f32 %v259_v46, %v248_v48 }
 0x110   :  { %v267_v53 = vmax.f32 %v263_v50, 0.0 }
 0x111   :  { %v321_v54 = vpack.c.bf16 %v266_v51, %v265_v49  ;;  %v268_v55 = vmax.f32 %v264_v52, 0.0 }
 0x113   :  { %283 = vst.msk [vmem:[%s499_s4] sm:$0xff] %vm282_vm3, %v321_v54  ;;  %v322_v56 = vpack.c.bf16 %v268_v55, %v267_v53 }
 0x115   :  { %284 = vst.msk [vmem:[%s499_s4 + $0x8] sm:$0xff] %vm282_vm3, %v322_v56 }

// kernel: ae_forward.7
= control target key start
LH: loop header
LB: loop body
LE: loop exit
PB: predicated region body
PF: predicated region fallthrough
CT: control target
= control target key end

     0   :  { %v275_v27 = vlaneseq  ;;  %v3452_v35 = vmov 1966171168   ;;  %s4323_s0 = inlined_call_operand.vmem [shape: bf16[2,1792], index: 0, kind: input, shape index: {}]   ;;  %s4324_s1 = inlined_call_operand.vmem [shape: bf16[1792,128], index: 1, kind: input, shape index: {}]   ;;  %s4325_s2 = inlined_call_operand.vmem [shape: f32[1,128], index: 2, kind: input, shape index: {}]   ;;  %s4326_s3 = inlined_call_operand.vmem [shape: bf16[128,16], index: 3, kind: input, shape index: {}]   ;;  %s4327_s4 = inlined_call_operand.vmem [shape: f32[1,16], index: 4, kind: input, shape index: {}]   ;;  %s4328_s5 = inlined_call_operand.vmem [shape: bf16[16,128], index: 5, kind: input, shape index: {}]   ;;  %s4329_s6 = inlined_call_operand.vmem [shape: f32[1,128], index: 6, kind: input, shape index: {}]   ;;  %s4330_s7 = inlined_call_operand.vmem [shape: bf16[128,1792], index: 7, kind: input, shape index: {}]   ;;  %s4331_s8 = inlined_call_operand.vmem [shape: f32[1,1792], index: 8, kind: input, shape index: {}]   ;;  %s4332_s9 = inlined_call_operand.hbm [shape: f32[2,16], index: 9, kind: output, shape index: {0}]   ;;  %s4333_s10 = inlined_call_operand.vmem [shape: bf16[2,1792], index: 10, kind: output, shape index: {1}]  }
   0x1   :  { %v3137_v0 = vld [vmem:[%s4324_s1 + $0x40] sm:$0xff]   ;;  %v3141_v4 = vld [vmem:[%s4324_s1 + $0x48] sm:$0xff]   ;;  %v3145_v8 = vld [vmem:[%s4324_s1 + $0x50] sm:$0xff]   ;;  %v273_v36 = vunpack.c.l.s4 %v3452_v35 }
   0x2   :  { %v3138_v1 = vld [vmem:[%s4324_s1] sm:$0xff]   ;;  %2941 = vmatprep.subr.bf16.mxu0 %v3137_v0  ;;  %v3142_v5 = vld [vmem:[%s4324_s1 + $0x8] sm:$0xff]   ;;  %v3146_v9 = vld [vmem:[%s4324_s1 + $0x10] sm:$0xff]   ;;  %v3605_v32 = vshrl.u32 %v275_v27, 7 }
   0x3   :  { %v3139_v2 = vld [vmem:[%s4324_s1 + $0xc0] sm:$0xff]   ;;  %2942 = vmatpush3.bf16.msra.mxu0 %v3138_v1  ;;  %v3143_v6 = vld [vmem:[%s4324_s1 + $0xc8] sm:$0xff]   ;;  %v3147_v10 = vld [vmem:[%s4324_s1 + $0xd0] sm:$0xff]   ;;  %v274_v39 = vunpack.c.0.s8 %v273_v36 }
   0x4   :  { %v3140_v3 = vld [vmem:[%s4324_s1 + $0x80] sm:$0xff]   ;;  %2963 = vmatprep.subr.bf16.mxu1 %v3139_v2  ;;  %2943 = vmatprep.subr.bf16.mxu0 %v3141_v4  ;;  %v3144_v7 = vld [vmem:[%s4324_s1 + $0x88] sm:$0xff]   ;;  %v3148_v11 = vld [vmem:[%s4324_s1 + $0x90] sm:$0xff]  }
   0x5   :  { %2964 = vmatpush3.bf16.msra.mxu1 %v3140_v3  ;;  %v3149_v12 = vld [vmem:[%s4324_s1 + $0x58] sm:$0xff]   ;;  %v3153_v16 = vld [vmem:[%s4324_s1 + $0x60] sm:$0xff]   ;;  %v3157_v20 = vld [vmem:[%s4324_s1 + $0x68] sm:$0xff]   ;;  %v3620_v41 = vsub.s32 %v274_v39, %v3605_v32 }
   0x6   :  { %2965 = vmatprep.subr.bf16.mxu1 %v3143_v6  ;;  %v3150_v13 = vld [vmem:[%s4324_s1 + $0x18] sm:$0xff]   ;;  %v3154_v17 = vld [vmem:[%s4324_s1 + $0x20] sm:$0xff]   ;;  %v3158_v21 = vld [vmem:[%s4324_s1 + $0x28] sm:$0xff]  }
   0x7   :  { %2944 = vmatpush3.bf16.msra.mxu0 %v3142_v5  ;;  %v3151_v14 = vld [vmem:[%s4324_s1 + $0xd8] sm:$0xff]   ;;  %v3155_v18 = vld [vmem:[%s4324_s1 + $0xe0] sm:$0xff]   ;;  %v3159_v22 = vld [vmem:[%s4324_s1 + $0xe8] sm:$0xff]  }
   0x8   :  { %2945 = vmatprep.subr.bf16.mxu0 %v3145_v8  ;;  %v3152_v15 = vld [vmem:[%s4324_s1 + $0x98] sm:$0xff]   ;;  %v3156_v19 = vld [vmem:[%s4324_s1 + $0xa0] sm:$0xff]   ;;  %v3160_v23 = vld [vmem:[%s4324_s1 + $0xa8] sm:$0xff]  }
   0x9   :  { %2966 = vmatpush3.bf16.msra.mxu1 %v3144_v7  ;;  %v3161_v24 = vld [vmem:[%s4324_s1 + $0x70] sm:$0xff]   ;;  %v3165_v29 = vld [vmem:[%s4324_s1 + $0x78] sm:$0xff]   ;;  %v36_v33 = vld [vmem:[%s4323_s0] sm:$0xff] }
   0xa   :  { %2967 = vmatprep.subr.bf16.mxu1 %v3147_v10  ;;  %v3162_v25 = vld [vmem:[%s4324_s1 + $0x30] sm:$0xff]   ;;  %v3166_v30 = vld [vmem:[%s4324_s1 + $0x38] sm:$0xff]   ;;  %v3170_v37 = vld [vmem:[%s4324_s1 + $0x140] sm:$0xff]   ;;  %v271_v38 = vcombine.high %v36_v33, %v36_v33  ;;  %v278_v42 = vrot.slane %v36_v33, %v3620_v41 }
   0xb   :  { %2946 = vmatpush3.bf16.msra.mxu0 %v3146_v9  ;;  %v3163_v26 = vld [vmem:[%s4324_s1 + $0xf0] sm:$0xff]   ;;  %v3167_v31 = vld [vmem:[%s4324_s1 + $0xf8] sm:$0xff]   ;;  %v3172_v40 = vld [vmem:[%s4324_s1 + $0x1c0] sm:$0xff]  }
   0xc   :  { %2947 = vmatprep.subr.bf16.mxu0 %v3149_v12  ;;  %v3164_v28 = vld [vmem:[%s4324_s1 + $0xb0] sm:$0xff]   ;;  %v3169_v34 = vld [vmem:[%s4324_s1 + $0xb8] sm:$0xff]   ;;  %v3624_v43 = vrot.slane %v271_v38, %v3620_v41  ;;  %v286_v44 = vcombine.high %v278_v42, %v278_v42  ;;  %v294_v45 = vrot.slane %v278_v42, %v3620_v41  ;;  %v3171_v48 = vld [vmem:[%s4324_s1 + $0x100] sm:$0xff]  }
   0xd   :  { %2968 = vmatpush3.bf16.msra.mxu1 %v3148_v11  ;;  %v3174_v51 = vld [vmem:[%s4324_s1 + $0x148] sm:$0xff]   ;;  %v3173_v53 = vld [vmem:[%s4324_s1 + $0x180] sm:$0xff]   ;;  %v3178_v57 = vld [vmem:[%s4324_s1 + $0x150] sm:$0xff]  }
   0xe   :  { %2969 = vmatprep.subr.bf16.mxu1 %v3151_v14  ;;  %v287_v46 = vcombine.high %v3624_v43, %v3624_v43  ;;  %v308_v47 = vrot.slane %v286_v44, %v3620_v41  ;;  %v316_v50 = vcombine.high %v294_v45, %v294_v45  ;;  %v3176_v54 = vld [vmem:[%s4324_s1 + $0x1c8] sm:$0xff]   ;;  %v3180_v59 = vld [vmem:[%s4324_s1 + $0x1d0] sm:$0xff]   ;;  %v3182_v61 = vld [vmem:[%s4324_s1 + $0x158] sm:$0xff]  }
   0xf   :  { %2948 = vmatpush3.bf16.msra.mxu0 %v3150_v13  ;;  %v3175_v56 = vld [vmem:[%s4324_s1 + $0x108] sm:$0xff]   ;;  %v3179_v60 = vld [vmem:[%s4324_s1 + $0x110] sm:$0xff]   ;;  %v3184_v63 = vld [vmem:[%s4324_s1 + $0x1d8] sm:$0xff]  }
  0x10   :  { %2949 = vmatprep.subr.bf16.mxu0 %v3153_v16  ;;  %v315_v49 = vrot.slane %v287_v46, %v3620_v41  ;;  %1085 = vmatprep.mubr.bf16.mxu0 %v308_v47  ;;  %v318_v52 = vcombine.high %v308_v47, %v308_v47  ;;  %v3177_v58 = vld [vmem:[%s4324_s1 + $0x188] sm:$0xff]   ;;  %v3181_v62 = vld [vmem:[%s4324_s1 + $0x190] sm:$0xff]   ;;  %v3183_v0 = vld [vmem:[%s4324_s1 + $0x118] sm:$0xff]  }
  0x11   :  { %2970 = vmatpush3.bf16.msra.mxu1 %v3152_v15  ;;  %v3186_v1 = vld [vmem:[%s4324_s1 + $0x160] sm:$0xff]   ;;  %v3185_v2 = vld [vmem:[%s4324_s1 + $0x198] sm:$0xff]   ;;  %v3190_v5 = vld [vmem:[%s4324_s1 + $0x168] sm:$0xff]  }
  0x12   :  { %2971 = vmatprep.subr.bf16.mxu1 %v3155_v18  ;;  %v319_v55 = vcombine.high %v315_v49, %v315_v49  ;;  %1125 = vmatprep.mubr.bf16.mxu1 %v318_v52  ;;  %v3188_v3 = vld [vmem:[%s4324_s1 + $0x1e0] sm:$0xff]   ;;  %v3192_v7 = vld [vmem:[%s4324_s1 + $0x1e8] sm:$0xff]   ;;  %v3194_v9 = vld [vmem:[%s4324_s1 + $0x170] sm:$0xff]  }
  0x13   :  { %2950 = vmatpush3.bf16.msra.mxu0 %v3154_v17  ;;  %v3187_v4 = vld [vmem:[%s4324_s1 + $0x120] sm:$0xff]   ;;  %v3191_v8 = vld [vmem:[%s4324_s1 + $0x128] sm:$0xff]   ;;  %v3196_v11 = vld [vmem:[%s4324_s1 + $0x1f0] sm:$0xff]   ;;  %v301_v17 = vrot.slane %v3624_v43, %v3620_v41 }
  0x14   :  { %2951 = vmatprep.subr.bf16.mxu0 %v3157_v20  ;;  %v3189_v6 = vld [vmem:[%s4324_s1 + $0x1a0] sm:$0xff]   ;;  %v3193_v10 = vld [vmem:[%s4324_s1 + $0x1a8] sm:$0xff]   ;;  %v3195_v12 = vld [vmem:[%s4324_s1 + $0x130] sm:$0xff]  }
  0x15   :  { %2972 = vmatpush3.bf16.msra.mxu1 %v3156_v19  ;;  %v3198_v13 = vld [vmem:[%s4324_s1 + $0x178] sm:$0xff]   ;;  %v3197_v14 = vld [vmem:[%s4324_s1 + $0x1b0] sm:$0xff]   ;;  %v3202_v18 = vld [vmem:[%s4324_s1 + $0x240] sm:$0xff]  }
  0x16   :  { %2973 = vmatprep.subr.bf16.mxu1 %v3159_v22  ;;  %v3200_v15 = vld [vmem:[%s4324_s1 + $0x1f8] sm:$0xff]   ;;  %v3204_v20 = vld [vmem:[%s4324_s1 + $0x2c0] sm:$0xff]   ;;  %v317_v22 = vcombine.high %v301_v17, %v301_v17  ;;  %v3210_v27 = vld [vmem:[%s4324_s1 + $0x250] sm:$0xff]  }
  0x17   :  { %2952 = vmatpush3.bf16.msra.mxu0 %v3158_v21  ;;  %v3199_v16 = vld [vmem:[%s4324_s1 + $0x138] sm:$0xff]   ;;  %v3203_v21 = vld [vmem:[%s4324_s1 + $0x200] sm:$0xff]   ;;  %v3213_v33 = vld [vmem:[%s4324_s1 + $0x290] sm:$0xff]  }
  0x18   :  { %2953 = vmatprep.subr.bf16.mxu0 %v3161_v24  ;;  %v3201_v19 = vld [vmem:[%s4324_s1 + $0x1b8] sm:$0xff]   ;;  %v3205_v24 = vld [vmem:[%s4324_s1 + $0x280] sm:$0xff]   ;;  %v3224_v43 = vld [vmem:[%s4324_s1 + $0x2e8] sm:$0xff]  }
  0x19   :  { %2974 = vmatpush3.bf16.msra.mxu1 %v3160_v23  ;;  %v3206_v23 = vld [vmem:[%s4324_s1 + $0x248] sm:$0xff]   ;;  %v3215_v35 = vld [vmem:[%s4324_s1 + $0x218] sm:$0xff]   ;;  %v3218_v36 = vld [vmem:[%s4324_s1 + $0x260] sm:$0xff]  }
  0x1a   :  { %2975 = vmatprep.subr.bf16.mxu1 %v3163_v26  ;;  %v3207_v26 = vld [vmem:[%s4324_s1 + $0x208] sm:$0xff]   ;;  %v3220_v38 = vld [vmem:[%s4324_s1 + $0x2e0] sm:$0xff]  }
  0x1b   :  { %2954 = vmatpush3.bf16.msra.mxu0 %v3162_v25  ;;  %v3208_v25 = vld [vmem:[%s4324_s1 + $0x2c8] sm:$0xff]   ;;  %v3219_v39 = vld [vmem:[%s4324_s1 + $0x220] sm:$0xff]  }
  0x1c   :  { %2955 = vmatprep.subr.bf16.mxu0 %v3165_v29  ;;  %v3212_v29 = vld [vmem:[%s4324_s1 + $0x2d0] sm:$0xff]   ;;  %v3221_v42 = vld [vmem:[%s4324_s1 + $0x2a0] sm:$0xff]   ;;  %v3223_v44 = vld [vmem:[%s4324_s1 + $0x228] sm:$0xff]  }
  0x1d   :  { %2976 = vmatpush3.bf16.msra.mxu1 %v3164_v28  ;;  %v3209_v28 = vld [vmem:[%s4324_s1 + $0x288] sm:$0xff]  }
  0x1e   :  { %2977 = vmatprep.subr.bf16.mxu1 %v3167_v31  ;;  %v3214_v31 = vld [vmem:[%s4324_s1 + $0x258] sm:$0xff]   ;;  %v37_v46 = vld [vmem:[%s4323_s0 + $0x8] sm:$0x3f] }
  0x1f   :  { %2956 = vmatpush3.bf16.msra.mxu0 %v3166_v30  ;;  %v3211_v30 = vld [vmem:[%s4324_s1 + $0x210] sm:$0xff]   ;;  %v3225_v47 = vld [vmem:[%s4324_s1 + $0x2a8] sm:$0xff]  }
  0x20   :  { %2985 = vmatprep.subr.bf16.mxu0 %v3170_v37  ;;  %v3217_v37 = vld [vmem:[%s4324_s1 + $0x298] sm:$0xff]  }
  0x21   :  { %2978 = vmatpush3.bf16.msra.mxu1 %v3169_v34  ;;  %v3216_v34 = vld [vmem:[%s4324_s1 + $0x2d8] sm:$0xff]  }
  0x22   :  { %3007 = vmatprep.subr.bf16.mxu1 %v3172_v40  ;;  %1086 = vmatmul.mubr.bf16.vlgmr.msra.gmra.mrb[0].mxu0 %v294_v45  ;;  %v3222_v40 = vld [vmem:[%s4324_s1 + $0x268] sm:$0xff]   ;;  %v3226_v45 = vld [vmem:[%s4324_s1 + $0x270] sm:$0xff]  }
  0x23   :  { %2986 = vmatpush3.bf16.msra.mxu0 %v3171_v48  ;;  %1165 = vmatprep.mubr.bf16.mxu0 %v315_v49  ;;  %v327_v48 = vrot.slane %v37_v46, %v3620_v41  ;;  %v320_v49 = vcombine.high %v37_v46, %v37_v46 }
  0x24   :  { %1126 = vmatmul.mubr.bf16.vlgmr.msra.gmra.mrb[0].mxu1 %v316_v50  ;;  %2987 = vmatprep.subr.bf16.mxu0 %v3174_v51  ;;  %v3228_v50 = vld [vmem:[%s4324_s1 + $0x2f0] sm:$0xff]  }
  0x25   :  { %3008 = vmatpush3.bf16.msra.mxu1 %v3173_v53  ;;  %1205 = vmatprep.mubr.bf16.mxu1 %v319_v55  ;;  %v3227_v51 = vld [vmem:[%s4324_s1 + $0x230] sm:$0xff]   ;;  %v335_v52 = vcombine.high %v327_v48, %v327_v48  ;;  %v334_v53 = vrot.slane %v320_v49, %v3620_v41 }
  0x26   :  { %3009 = vmatprep.subr.bf16.mxu1 %v3176_v54  ;;  %v3230_v54 = vld [vmem:[%s4324_s1 + $0x278] sm:$0xff]   ;;  %v3229_v55 = vld [vmem:[%s4324_s1 + $0x2b0] sm:$0xff]  }
  0x27   :  { %2988 = vmatpush3.bf16.msra.mxu0 %v3175_v56  ;;  %v357_v56 = vrot.slane %v335_v52, %v3620_v41 }
  0x28   :  { %2989 = vmatprep.subr.bf16.mxu0 %v3178_v57  ;;  %v3232_v57 = vld [vmem:[%s4324_s1 + $0x2f8] sm:$0xff]  }
  0x29   :  { %3010 = vmatpush3.bf16.msra.mxu1 %v3177_v58  ;;  %v3231_v58 = vld [vmem:[%s4324_s1 + $0x238] sm:$0xff]  }
  0x2a   :  { %3011 = vmatprep.subr.bf16.mxu1 %v3180_v59  ;;  %v366_v59 = vcombine.high %v357_v56, %v357_v56 }
  0x2b   :  { %2990 = vmatpush3.bf16.msra.mxu0 %v3179_v60  ;;  %v336_v60 = vcombine.high %v334_v53, %v334_v53 }
  0x2c   :  { %2991 = vmatprep.subr.bf16.mxu0 %v3182_v61  ;;  %v343_v61 = vrot.slane %v327_v48, %v3620_v41 }
  0x2d   :  { %3012 = vmatpush3.bf16.msra.mxu1 %v3181_v62  ;;  %v3234_v62 = vld [vmem:[%s4324_s1 + $0x340] sm:$0xff]  }
  0x2e   :  { %3013 = vmatprep.subr.bf16.mxu1 %v3184_v63  ;;  %v3233_v63 = vld [vmem:[%s4324_s1 + $0x2b8] sm:$0xff]  }
  0x2f   :  { %2992 = vmatpush3.bf16.msra.mxu0 %v3183_v0  ;;  %v3235_v0 = vld [vmem:[%s4324_s1 + $0x300] sm:$0xff]  }
  0x30   :  { %2993 = vmatprep.subr.bf16.mxu0 %v3186_v1  ;;  %v364_v1 = vrot.slane %v336_v60, %v3620_v41 }
  0x31   :  { %3014 = vmatpush3.bf16.msra.mxu1 %v3185_v2  ;;  %v365_v2 = vcombine.high %v343_v61, %v343_v61 }
  0x32   :  { %3015 = vmatprep.subr.bf16.mxu1 %v3188_v3  ;;  %v3236_v3 = vld [vmem:[%s4324_s1 + $0x348] sm:$0xff]  }
  0x33   :  { %2994 = vmatpush3.bf16.msra.mxu0 %v3187_v4  ;;  %v3237_v4 = vld [vmem:[%s4324_s1 + $0x308] sm:$0xff]  }
  0x34   :  { %2995 = vmatprep.subr.bf16.mxu0 %v3190_v5  ;;  %v3238_v5 = vld [vmem:[%s4324_s1 + $0x350] sm:$0xff]  }
  0x35   :  { %3016 = vmatpush3.bf16.msra.mxu1 %v3189_v6  ;;  %v3239_v6 = vld [vmem:[%s4324_s1 + $0x310] sm:$0xff]  }
  0x36   :  { %3017 = vmatprep.subr.bf16.mxu1 %v3192_v7  ;;  %v3240_v7 = vld [vmem:[%s4324_s1 + $0x358] sm:$0xff]  }
  0x37   :  { %2996 = vmatpush3.bf16.msra.mxu0 %v3191_v8  ;;  %v3241_v8 = vld [vmem:[%s4324_s1 + $0x318] sm:$0xff]  }
  0x38   :  { %2997 = vmatprep.subr.bf16.mxu0 %v3194_v9  ;;  %v3242_v9 = vld [vmem:[%s4324_s1 + $0x360] sm:$0xff]  }
  0x39   :  { %3018 = vmatpush3.bf16.msra.mxu1 %v3193_v10  ;;  %v3243_v10 = vld [vmem:[%s4324_s1 + $0x320] sm:$0xff]  }
  0x3a   :  { %3019 = vmatprep.subr.bf16.mxu1 %v3196_v11  ;;  %v3244_v11 = vld [vmem:[%s4324_s1 + $0x368] sm:$0xff]  }
  0x3b   :  { %2998 = vmatpush3.bf16.msra.mxu0 %v3195_v12  ;;  %v3245_v12 = vld [vmem:[%s4324_s1 + $0x328] sm:$0xff]  }
  0x3c   :  { %2999 = vmatprep.subr.bf16.mxu0 %v3198_v13  ;;  %v3246_v13 = vld [vmem:[%s4324_s1 + $0x370] sm:$0xff]  }
  0x3d   :  { %3020 = vmatpush3.bf16.msra.mxu1 %v3197_v14  ;;  %v3247_v14 = vld [vmem:[%s4324_s1 + $0x330] sm:$0xff]  }
  0x3e   :  { %3021 = vmatprep.subr.bf16.mxu1 %v3200_v15  ;;  %v3248_v15 = vld [vmem:[%s4324_s1 + $0x378] sm:$0xff]  }
  0x3f   :  { %3000 = vmatpush3.bf16.msra.mxu0 %v3199_v16  ;;  %v3249_v16 = vld [vmem:[%s4324_s1 + $0x338] sm:$0xff]  }
  0x40   :  { %3029 = vmatprep.subr.bf16.mxu0 %v3202_v18 }
  0x41   :  { %3022 = vmatpush3.bf16.msra.mxu1 %v3201_v19 }
  0x42   :  { %1166 = vmatmul.mubr.bf16.vlgmr.msra.gmra.mrb[4].mxu0 %v301_v17  ;;  %3051 = vmatprep.subr.bf16.mxu1 %v3204_v20  ;;  %v350_v17 = vrot.slane %v334_v53, %v3620_v41 }
  0x43   :  { %3030 = vmatpush3.bf16.msra.mxu0 %v3203_v21  ;;  %1245 = vmatprep.mubr.bf16.mxu0 %v357_v56 }
  0x44   :  { %1206 = vmatmul.mubr.bf16.vlgmr.msra.gmra.mrb[4].mxu1 %v317_v22  ;;  %3031 = vmatprep.subr.bf16.mxu0 %v3206_v23 }
  0x45   :  { %3052 = vmatpush3.bf16.msra.mxu1 %v3205_v24  ;;  %1285 = vmatprep.mubr.bf16.mxu1 %v366_v59 }
  0x46   :  { %3053 = vmatprep.subr.bf16.mxu1 %v3208_v25 }
  0x47   :  { %3032 = vmatpush3.bf16.msra.mxu0 %v3207_v26 }
  0x48   :  { %3033 = vmatprep.subr.bf16.mxu0 %v3210_v27 }
  0x49   :  { %3054 = vmatpush3.bf16.msra.mxu1 %v3209_v28 }
  0x4a   :  { %3055 = vmatprep.subr.bf16.mxu1 %v3212_v29 }
  0x4b   :  { %3034 = vmatpush3.bf16.msra.mxu0 %v3211_v30 }
  0x4c   :  { %3035 = vmatprep.subr.bf16.mxu0 %v3214_v31 }
  0x4d   :  { %3056 = vmatpush3.bf16.msra.mxu1 %v3213_v33 }
  0x4e   :  { %3057 = vmatprep.subr.bf16.mxu1 %v3216_v34 }
  0x4f   :  { %3036 = vmatpush3.bf16.msra.mxu0 %v3215_v35 }
  0x50   :  { %3037 = vmatprep.subr.bf16.mxu0 %v3218_v36 }
  0x51   :  { %3058 = vmatpush3.bf16.msra.mxu1 %v3217_v37 }
  0x52   :  { %3059 = vmatprep.subr.bf16.mxu1 %v3220_v38 }
  0x53   :  { %3038 = vmatpush3.bf16.msra.mxu0 %v3219_v39 }
  0x54   :  { %3039 = vmatprep.subr.bf16.mxu0 %v3222_v40 }
  0x55   :  { %3060 = vmatpush3.bf16.msra.mxu1 %v3221_v42 }
  0x56   :  { %3061 = vmatprep.subr.bf16.mxu1 %v3224_v43 }
  0x57   :  { %3040 = vmatpush3.bf16.msra.mxu0 %v3223_v44 }
  0x58   :  { %3041 = vmatprep.subr.bf16.mxu0 %v3226_v45 }
  0x59   :  { %3062 = vmatpush3.bf16.msra.mxu1 %v3225_v47 }
  0x5a   :  { %3063 = vmatprep.subr.bf16.mxu1 %v3228_v50 }
  0x5b   :  { %3042 = vmatpush3.bf16.msra.mxu0 %v3227_v51 }
  0x5c   :  { %3043 = vmatprep.subr.bf16.mxu0 %v3230_v54 }
  0x5d   :  { %3064 = vmatpush3.bf16.msra.mxu1 %v3229_v55 }
  0x5e   :  { %3065 = vmatprep.subr.bf16.mxu1 %v3232_v57 }
  0x5f   :  { %3044 = vmatpush3.bf16.msra.mxu0 %v3231_v58 }
  0x60   :  { %3073 = vmatprep.subr.bf16.mxu0 %v3234_v62 }
  0x61   :  { %3066 = vmatpush3.bf16.msra.mxu1 %v3233_v63 }
  0x62   :  { %1246 = vmatmul.mubr.bf16.vlgmr.msra.gmra.mrb[8].mxu0 %v343_v61 }
  0x63   :  { %3074 = vmatpush3.bf16.msra.mxu0 %v3235_v0  ;;  %1325 = vmatprep.mubr.bf16.mxu0 %v364_v1 }
  0x64   :  { %1286 = vmatmul.mubr.bf16.vlgmr.msra.gmra.mrb[8].mxu1 %v365_v2  ;;  %3075 = vmatprep.subr.bf16.mxu0 %v3236_v3 }
  0x67   :  { %3076 = vmatpush3.bf16.msra.mxu0 %v3237_v4 }
  0x68   :  { %3077 = vmatprep.subr.bf16.mxu0 %v3238_v5 }
  0x6b   :  { %3078 = vmatpush3.bf16.msra.mxu0 %v3239_v6 }
  0x6c   :  { %3079 = vmatprep.subr.bf16.mxu0 %v3240_v7 }
  0x6f   :  { %3080 = vmatpush3.bf16.msra.mxu0 %v3241_v8 }
  0x70   :  { %3081 = vmatprep.subr.bf16.mxu0 %v3242_v9 }
  0x73   :  { %3082 = vmatpush3.bf16.msra.mxu0 %v3243_v10 }
  0x74   :  { %3083 = vmatprep.subr.bf16.mxu0 %v3244_v11 }
  0x77   :  { %3084 = vmatpush3.bf16.msra.mxu0 %v3245_v12 }
  0x78   :  { %3085 = vmatprep.subr.bf16.mxu0 %v3246_v13 }
  0x7b   :  { %3086 = vmatpush3.bf16.msra.mxu0 %v3247_v14 }
  0x7c   :  { %3087 = vmatprep.subr.bf16.mxu0 %v3248_v15 }
  0x7f   :  { %3088 = vmatpush3.bf16.msra.mxu0 %v3249_v16 }
  0x82   :  { %1326 = vmatmul.mubr.bf16.vlgmr.msra.gmra.mrb[12].mxu0 %v350_v17 }
  0x83   :  { %16 = vsyncpa [#allocation3], 0  ;;  %v3251_v18 = vld [vmem:[%s4326_s3] sm:$0xff]   ;;  %v3453_v19 = vmov 0.0   ;;  %v3252_v20 = vld [vmem:[%s4326_s3 + $0x8] sm:$0xff]   ;;  %vm3454_vm0 = vmmov 0  }
  0x84   :  { %3106 = vmatprep.subr.bf16.mxu1 %v3453_v19  ;;  %3126 = vmatprep.subr.bf16.mxu0 %v3453_v19  ;;  %v3253_v21 = vld [vmem:[%s4326_s3 + $0x10] sm:$0xff]   ;;  %v3254_v22 = vld [vmem:[%s4326_s3 + $0x18] sm:$0xff]   ;;  %v3255_v23 = vld [vmem:[%s4326_s3 + $0x20] sm:$0xff]   ;;  %vm1447_vm1 = vcmask 123904   ;;  %vm1465_vm2 = vcmask 130048   ;;  %s3456_s26 = smov [#allocation2]  }
  0x85   :  { %3107 = vmatpush3.bf16.msra.mxu1 %v3251_v18  ;;  %v3256_v24 = vld [vmem:[%s4326_s3 + $0x28] sm:$0xff]   ;;  %v3257_v25 = vld [vmem:[%s4326_s3 + $0x30] sm:$0xff]   ;;  %v3258_v26 = vld [vmem:[%s4326_s3 + $0x38] sm:$0xff]   ;;  %3122 = vmatprep.mubr.msk.bf16.mxu1 %vm3454_vm0, %v3453_v19  ;;  %s2685_s27 = sshll.u32 %s3456_s26, 4  ;;  %s2686_s27 = int_to_ptr.vmem [resolvable:$true] %s2685_s27 }
  0x86   :  { %3108 = vmatprep.subr.bf16.mxu1 %v3453_v19  ;;  %3128 = vmatprep.mubr.msk.bf16.mxu0 %vm3454_vm0, %v3453_v19  ;;  %v3259_v27 = vld [vmem:[%s4328_s5] sm:$0xff]   ;;  %v3268_v14 = vld [vmem:[%s4330_s7 + $0x74] ss:$56 sps:$4 sm:$0xff]   ;;  %v3266_v15 = vld [vmem:[%s4330_s7 + $0x70] ss:$56 sps:$4 sm:$0xff]   ;;  %s3428_s28 = scalar_lea.vmem %s2686_s27, 32  ;;  %p3433_p1 = scmp.lt.s32.totalorder %s2686_s27, %s2686_s27 }
  0x87   :  { %3127 = vmatpush3.bf16.msra.mxu0 %v3259_v27  ;;  %v2697_v29 = vld [vmem:[%s4325_s2] ss:$0 sm:$0xff]  ;;  %v3262_v12 = vld [vmem:[%s4330_s7 + $0x4] ss:$56 sps:$4 sm:$0xff]   ;;  %v3280_v18 = vld [vmem:[%s4330_s7 + $0x154] ss:$56 sps:$4 sm:$0xff]   ;;  %p3429_p0 = scmp.ne.s32.totalorder %s2686_s27, %s3428_s28  ;;  %p3434_p2 = scmp.lt.s32.totalorder %s3428_s28, %s3428_s28 }
  0x88   :  { %v3260_v11 = vld [vmem:[%s4330_s7] ss:$56 sps:$4 sm:$0xff]   ;;  %v3265_v13 = vld [vmem:[%s4330_s7 + $0xc] ss:$56 sps:$4 sm:$0xff]  }
  0x89   :  { %3109 = vmatpush3.bf16.msra.mxu1 %v3252_v20  ;;  %2298 = vmatprep.subr.bf16.mxu0 %v3265_v13  ;;  %v3274_v16 = vld [vmem:[%s4330_s7 + $0xe4] ss:$56 sps:$4 sm:$0xff]   ;;  %v3272_v17 = vld [vmem:[%s4330_s7 + $0xe0] ss:$56 sps:$4 sm:$0xff]   ;;  %p3435_p3 = por %p3434_p2, %p3433_p1 }
  0x8a   :  { %3110 = vmatprep.subr.bf16.mxu1 %v3453_v19  ;;  %v3286_v20 = vld [vmem:[%s4330_s7 + $0x1c4] ss:$56 sps:$4 sm:$0xff]   ;;  %v3329_v13 = vld [vmem:[%s4330_s7 + $0x168] ss:$56 sps:$4 sm:$0xff]  }
  0x8b   :  { %p3436_p4 = pnand %p3435_p3, %p3429_p0 }
  0x8d   :  { %3111 = vmatpush3.bf16.msra.mxu1 %v3253_v21  ;;  %v3284_v21 = vld [vmem:[%s4330_s7 + $0x1c0] ss:$56 sps:$4 sm:$0xff]  }
  0x8e   :  { %3112 = vmatprep.subr.bf16.mxu1 %v3453_v19 }
  0x91   :  { %3113 = vmatpush3.bf16.msra.mxu1 %v3254_v22  ;;  %v3292_v22 = vld [vmem:[%s4330_s7 + $0x234] ss:$56 sps:$4 sm:$0xff]  }
  0x92   :  { %3114 = vmatprep.subr.bf16.mxu1 %v3453_v19 }
  0x95   :  { %3115 = vmatpush3.bf16.msra.mxu1 %v3255_v23  ;;  %v3290_v23 = vld [vmem:[%s4330_s7 + $0x230] ss:$56 sps:$4 sm:$0xff]  }
  0x96   :  { %3116 = vmatprep.subr.bf16.mxu1 %v3453_v19 }
  0x99   :  { %3117 = vmatpush3.bf16.msra.mxu1 %v3256_v24  ;;  %v3298_v24 = vld [vmem:[%s4330_s7 + $0x2a4] ss:$56 sps:$4 sm:$0xff]  }
  0x9a   :  { %3118 = vmatprep.subr.bf16.mxu1 %v3453_v19 }
  0x9d   :  { %3119 = vmatpush3.bf16.msra.mxu1 %v3257_v25  ;;  %v3296_v25 = vld [vmem:[%s4330_s7 + $0x2a0] ss:$56 sps:$4 sm:$0xff]  }
  0x9e   :  { %3120 = vmatprep.subr.bf16.mxu1 %v3453_v19  ;;  %v3278_v19 = vld [vmem:[%s4330_s7 + $0x150] ss:$56 sps:$4 sm:$0xff]  }
  0xa1   :  { %3121 = vmatpush3.bf16.msra.mxu1 %v3258_v26  ;;  %v2810_v26 = vld [vmem:[%s4327_s4] ss:$0 sm:$0xff] }
  0xa2   :  { %2257 = vmatprep.subr.bf16.mxu1 %v3262_v12  ;;  %v3326_v12 = vld [vmem:[%s4330_s7 + $0x160] ss:$56 sps:$4 sm:$0xff]  }
  0xf5   :  { %v2957_v28 = vpop.f32.mrb[0].mxu0 }
  0xf6   :  { %v2958_v30 = vpop.f32.mrb[1].mxu0 }
  0xf7   :  { %v2959_v31 = vadd.f32 %v2958_v30, %v2957_v28  ;;  %v2960_v33 = vpop.f32.mrb[2].mxu0  ;;  %v2979_v34 = vpop.f32.mrb[0].mxu1 }
  0xf8   :  { %v2961_v35 = vpop.f32.mrb[3].mxu0  ;;  %v2980_v36 = vpop.f32.mrb[1].mxu1 }
  0xf9   :  { %v1088_v37 = vadd.f32 %v2959_v31, %v2697_v29  ;;  %v2981_v38 = vadd.f32 %v2980_v36, %v2979_v34  ;;  %v2982_v39 = vpop.f32.mrb[2].mxu1  ;;  %v3263_v34 = vld [vmem:[%s4330_s7 + $0x8] ss:$56 sps:$4 sm:$0xff]   ;;  %v3271_v36 = vld [vmem:[%s4330_s7 + $0x7c] ss:$56 sps:$4 sm:$0xff]  }
  0xfa   :  { %v2983_v40 = vpop.f32.mrb[3].mxu1  ;;  %v3275_v39 = vld [vmem:[%s4330_s7 + $0xe8] ss:$56 sps:$4 sm:$0xff]  }
  0xfb   :  { %v1128_v42 = vadd.f32 %v2981_v38, %v1088_v37  ;;  %v3269_v37 = vld [vmem:[%s4330_s7 + $0x78] ss:$56 sps:$4 sm:$0xff]   ;;  %v3277_v38 = vld [vmem:[%s4330_s7 + $0xec] ss:$56 sps:$4 sm:$0xff]   ;;  %v3283_v40 = vld [vmem:[%s4330_s7 + $0x15c] ss:$56 sps:$4 sm:$0xff]  }
 0x115   :  { %v3001_v43 = vpop.f32.mrb[4].mxu0 }
 0x116   :  { %v3002_v44 = vpop.f32.mrb[5].mxu0 }
 0x117   :  { %v3003_v45 = vadd.f32 %v3002_v44, %v3001_v43  ;;  %v3004_v46 = vpop.f32.mrb[6].mxu0  ;;  %v3023_v47 = vpop.f32.mrb[4].mxu1  ;;  %v3289_v43 = vld [vmem:[%s4330_s7 + $0x1cc] ss:$56 sps:$4 sm:$0xff]   ;;  %v3287_v44 = vld [vmem:[%s4330_s7 + $0x1c8] ss:$56 sps:$4 sm:$0xff]  }
 0x118   :  { %v3005_v48 = vpop.f32.mrb[7].mxu0  ;;  %v3024_v49 = vpop.f32.mrb[5].mxu1  ;;  %v3293_v46 = vld [vmem:[%s4330_s7 + $0x238] ss:$56 sps:$4 sm:$0xff]  }
 0x119   :  { %v1168_v50 = vadd.f32 %v3003_v45, %v1128_v42  ;;  %v3025_v51 = vadd.f32 %v3024_v49, %v3023_v47  ;;  %v3026_v52 = vpop.f32.mrb[6].mxu1  ;;  %v3281_v42 = vld [vmem:[%s4330_s7 + $0x158] ss:$56 sps:$4 sm:$0xff]   ;;  %v3295_v45 = vld [vmem:[%s4330_s7 + $0x23c] ss:$56 sps:$4 sm:$0xff]  }
 0x11a   :  { %v3027_v53 = vpop.f32.mrb[7].mxu1  ;;  %v3301_v47 = vld [vmem:[%s4330_s7 + $0x2ac] ss:$56 sps:$4 sm:$0xff]   ;;  %v3299_v48 = vld [vmem:[%s4330_s7 + $0x2a8] ss:$56 sps:$4 sm:$0xff]  }
 0x11b   :  { %v1208_v54 = vadd.f32 %v3025_v51, %v1168_v50  ;;  %v3304_v49 = vld [vmem:[%s4330_s7 + $0x314] ss:$56 sps:$4 sm:$0xff]   ;;  %v3302_v51 = vld [vmem:[%s4330_s7 + $0x310] ss:$56 sps:$4 sm:$0xff]  }
 0x11c   :  { %v3307_v50 = vld [vmem:[%s4330_s7 + $0x31c] ss:$56 sps:$4 sm:$0xff]   ;;  %v3305_v52 = vld [vmem:[%s4330_s7 + $0x318] ss:$56 sps:$4 sm:$0xff]  }
 0x11d   :  { %v3310_v53 = vld [vmem:[%s4330_s7 + $0x14] ss:$56 sps:$4 sm:$0xff]  }
 0x135   :  { %v3045_v55 = vpop.f32.mrb[8].mxu0 }
 0x136   :  { %v3046_v56 = vpop.f32.mrb[9].mxu0 }
 0x137   :  { %v3047_v57 = vadd.f32 %v3046_v56, %v3045_v55  ;;  %v3048_v58 = vpop.f32.mrb[10].mxu0  ;;  %v3067_v59 = vpop.f32.mrb[8].mxu1  ;;  %v3455_v55 = vmov 0   ;;  %v2819_v56 = vld [vmem:[%s4329_s6] ss:$0 sm:$0xff] }
 0x138   :  { %v3049_v60 = vpop.f32.mrb[11].mxu0  ;;  %v3068_v61 = vpop.f32.mrb[9].mxu1 }
 0x139   :  { %v1248_v62 = vadd.f32 %v3047_v57, %v1208_v54  ;;  %v3069_v63 = vadd.f32 %v3068_v61, %v3067_v59  ;;  %v3070_v0 = vpop.f32.mrb[10].mxu1  ;;  %v3313_v54 = vld [vmem:[%s4330_s7 + $0x1c] ss:$56 sps:$4 sm:$0xff]  }
 0x13a   :  { %v3071_v1 = vpop.f32.mrb[11].mxu1  ;;  %v3311_v0 = vld [vmem:[%s4330_s7 + $0x18] ss:$56 sps:$4 sm:$0xff]  }
 0x13b   :  { %v1288_v2 = vadd.f32 %v3069_v63, %v1248_v62  ;;  %v3308_v63 = vld [vmem:[%s4330_s7 + $0x10] ss:$56 sps:$4 sm:$0xff]  }
 0x155   :  { %v3089_v3 = vpop.f32.mrb[12].mxu0 }
 0x156   :  { %v3090_v4 = vpop.f32.mrb[13].mxu0 }
 0x157   :  { %v3091_v5 = vadd.f32 %v3090_v4, %v3089_v3  ;;  %v3092_v6 = vpop.f32.mrb[14].mxu0  ;;  %v3319_v3 = vld [vmem:[%s4330_s7 + $0x8c] ss:$56 sps:$4 sm:$0xff]   ;;  %v3314_v4 = vld [vmem:[%s4330_s7 + $0x80] ss:$56 sps:$4 sm:$0xff]  }
 0x158   :  { %v3093_v7 = vpop.f32.mrb[15].mxu0  ;;  %v3322_v6 = vld [vmem:[%s4330_s7 + $0xf4] ss:$56 sps:$4 sm:$0xff]  }
 0x159   :  { %v1328_v8 = vadd.f32 %v3091_v5, %v1288_v2  ;;  %v3316_v2 = vld [vmem:[%s4330_s7 + $0x84] ss:$56 sps:$4 sm:$0xff]   ;;  %v3317_v5 = vld [vmem:[%s4330_s7 + $0x88] ss:$56 sps:$4 sm:$0xff]  }
 0x15a   :  { %v3325_v7 = vld [vmem:[%s4330_s7 + $0xfc] ss:$56 sps:$4 sm:$0xff]  }
 0x15b   :  { %v1333_v9 = vmax.f32 %v1328_v8, 0.0  ;;  %v3320_v8 = vld [vmem:[%s4330_s7 + $0xf0] ss:$56 sps:$4 sm:$0xff]  }
 0x15d   :  { %v1334_v10 = vpack.c.bf16 %v1333_v9, %v1333_v9  ;;  %v3323_v9 = vld [vmem:[%s4330_s7 + $0xf8] ss:$56 sps:$4 sm:$0xff]  }
 0x15f   :  { %3123 = vmatmul.mubr.bf16.vlgmr.msra.gmra.mrb[12].mxu1 %v1334_v10  ;;  %v3328_v10 = vld [vmem:[%s4330_s7 + $0x164] ss:$56 sps:$4 sm:$0xff]  }
 0x160   :  { %2258 = vmatpush1.bf16.msra.mxu1 %v3260_v11  ;;  %2289 = vmatprep.mubr.bf16.mxu1 %v3455_v55  ;;  %v3331_v11 = vld [vmem:[%s4330_s7 + $0x16c] ss:$56 sps:$4 sm:$0xff]  }
 0x161   :  { %2259 = vmatprep.subr.bf16.mxu1 %v3268_v14  ;;  %v3334_v14 = vld [vmem:[%s4330_s7 + $0x1d4] ss:$56 sps:$4 sm:$0xff]  }
 0x164   :  { %2260 = vmatpush1.bf16.msra.mxu1 %v3266_v15  ;;  %v3337_v15 = vld [vmem:[%s4330_s7 + $0x1dc] ss:$56 sps:$4 sm:$0xff]  }
 0x165   :  { %2261 = vmatprep.subr.bf16.mxu1 %v3274_v16  ;;  %v3332_v16 = vld [vmem:[%s4330_s7 + $0x1d0] ss:$56 sps:$4 sm:$0xff]  }
 0x168   :  { %2262 = vmatpush1.bf16.msra.mxu1 %v3272_v17  ;;  %v3335_v17 = vld [vmem:[%s4330_s7 + $0x1d8] ss:$56 sps:$4 sm:$0xff]  }
 0x169   :  { %2263 = vmatprep.subr.bf16.mxu1 %v3280_v18  ;;  %v3340_v18 = vld [vmem:[%s4330_s7 + $0x244] ss:$56 sps:$4 sm:$0xff]  }
 0x16c   :  { %2264 = vmatpush1.bf16.msra.mxu1 %v3278_v19  ;;  %v3343_v19 = vld [vmem:[%s4330_s7 + $0x24c] ss:$56 sps:$4 sm:$0xff]  }
 0x16d   :  { %2265 = vmatprep.subr.bf16.mxu1 %v3286_v20  ;;  %v3338_v20 = vld [vmem:[%s4330_s7 + $0x240] ss:$56 sps:$4 sm:$0xff]  }
 0x170   :  { %2266 = vmatpush1.bf16.msra.mxu1 %v3284_v21  ;;  %v3341_v21 = vld [vmem:[%s4330_s7 + $0x248] ss:$56 sps:$4 sm:$0xff]  }
 0x171   :  { %2267 = vmatprep.subr.bf16.mxu1 %v3292_v22  ;;  %v3346_v22 = vld [vmem:[%s4330_s7 + $0x2b4] ss:$56 sps:$4 sm:$0xff]  }
 0x174   :  { %2268 = vmatpush1.bf16.msra.mxu1 %v3290_v23  ;;  %v3349_v23 = vld [vmem:[%s4330_s7 + $0x2bc] ss:$56 sps:$4 sm:$0xff]  }
 0x175   :  { %2269 = vmatprep.subr.bf16.mxu1 %v3298_v24  ;;  %v3344_v24 = vld [vmem:[%s4330_s7 + $0x2b0] ss:$56 sps:$4 sm:$0xff]  }
 0x178   :  { %2270 = vmatpush1.bf16.msra.mxu1 %v3296_v25  ;;  %v3347_v25 = vld [vmem:[%s4330_s7 + $0x2b8] ss:$56 sps:$4 sm:$0xff]  }
 0x179   :  { %2271 = vmatprep.subr.bf16.mxu1 %v3304_v49  ;;  %v3385_v49 = vld [vmem:[%s4330_s7 + $0x1ec] ss:$56 sps:$4 sm:$0xff]  }
 0x17c   :  { %2272 = vmatpush1.bf16.msra.mxu1 %v3302_v51  ;;  %v3383_v51 = vld [vmem:[%s4330_s7 + $0x1e8] ss:$56 sps:$4 sm:$0xff]  }
 0x17d   :  { %2339 = vmatprep.subr.bf16.mxu1 %v3310_v53  ;;  %v3391_v53 = vld [vmem:[%s4330_s7 + $0x25c] ss:$56 sps:$4 sm:$0xff]  }
 0x232   :  { %v1440_v27 = vpop.f32.mrb[12].mxu1 }
 0x233   :  { %v1441_v28 = vadd.f32 %v2810_v26, %v1440_v27  ;;  %v3124_v29 = vpop.f32.mrb[13].mxu1  ;;  %v3352_v26 = vld [vmem:[%s4330_s7 + $0x324] ss:$56 sps:$4 sm:$0xff]  }
 0x234   :  { %v1443_v30 = vpop.f32.mrb[14].mxu1  ;;  %v3355_v27 = vld [vmem:[%s4330_s7 + $0x32c] ss:$56 sps:$4 sm:$0xff]   ;;  %v3353_v29 = vld [vmem:[%s4330_s7 + $0x328] ss:$56 sps:$4 sm:$0xff]  }
 0x235   :  { %v1446_v31 = vmax.f32 %v1441_v28, 0.0  ;;  %v3125_v33 = vpop.f32.mrb[15].mxu1  ;;  %v3350_v28 = vld [vmem:[%s4330_s7 + $0x320] ss:$56 sps:$4 sm:$0xff]   ;;  %v3358_v30 = vld [vmem:[%s4330_s7 + $0x24] ss:$56 sps:$4 sm:$0xff]  }
 0x236   :  { %v3356_v33 = vld [vmem:[%s4330_s7 + $0x20] ss:$56 sps:$4 sm:$0xff]  }
 0x237   :  { %v1449_v35 = vpack.c.bf16 %v1446_v31, %v1446_v31  ;;  %1448 = vst.msk [vmem:[#allocation2] sm:$0x3] %vm1447_vm1, %v1446_v31  ;;  %v3361_v31 = vld [vmem:[%s4330_s7 + $0x2c] ss:$56 sps:$4 sm:$0xff]  }
 0x239   :  { %3129 = vmatmul.mubr.msk.bf16.vlgmr.msra.gmra.mrb[16].mxu0 %vm1465_vm2, %v1449_v35  ;;  %v3364_v35 = vld [vmem:[%s4330_s7 + $0x94] ss:$56 sps:$4 sm:$0xff]  }
 0x23a   :  { %2299 = vmatpush1.bf16.msra.mxu0 %v3263_v34  ;;  %2330 = vmatprep.mubr.bf16.mxu0 %v3455_v55  ;;  %v3359_v34 = vld [vmem:[%s4330_s7 + $0x28] ss:$56 sps:$4 sm:$0xff]  }
 0x23b   :  { %2300 = vmatprep.subr.bf16.mxu0 %v3271_v36  ;;  %v3367_v36 = vld [vmem:[%s4330_s7 + $0x9c] ss:$56 sps:$4 sm:$0xff]  }
 0x23e   :  { %2301 = vmatpush1.bf16.msra.mxu0 %v3269_v37  ;;  %v3362_v37 = vld [vmem:[%s4330_s7 + $0x90] ss:$56 sps:$4 sm:$0xff]  }
 0x23f   :  { %2302 = vmatprep.subr.bf16.mxu0 %v3277_v38  ;;  %v3365_v38 = vld [vmem:[%s4330_s7 + $0x98] ss:$56 sps:$4 sm:$0xff]  }
 0x242   :  { %2303 = vmatpush1.bf16.msra.mxu0 %v3275_v39  ;;  %v3370_v39 = vld [vmem:[%s4330_s7 + $0x104] ss:$56 sps:$4 sm:$0xff]  }
 0x243   :  { %2304 = vmatprep.subr.bf16.mxu0 %v3283_v40  ;;  %v3373_v40 = vld [vmem:[%s4330_s7 + $0x10c] ss:$56 sps:$4 sm:$0xff]  }
 0x246   :  { %2305 = vmatpush1.bf16.msra.mxu0 %v3281_v42  ;;  %v3368_v42 = vld [vmem:[%s4330_s7 + $0x100] ss:$56 sps:$4 sm:$0xff]  }
 0x247   :  { %2306 = vmatprep.subr.bf16.mxu0 %v3289_v43  ;;  %v3371_v43 = vld [vmem:[%s4330_s7 + $0x108] ss:$56 sps:$4 sm:$0xff]  }
 0x24a   :  { %2307 = vmatpush1.bf16.msra.mxu0 %v3287_v44  ;;  %v3376_v44 = vld [vmem:[%s4330_s7 + $0x174] ss:$56 sps:$4 sm:$0xff]  }
 0x24b   :  { %2308 = vmatprep.subr.bf16.mxu0 %v3295_v45  ;;  %v3379_v45 = vld [vmem:[%s4330_s7 + $0x17c] ss:$56 sps:$4 sm:$0xff]  }
 0x24e   :  { %2309 = vmatpush1.bf16.msra.mxu0 %v3293_v46  ;;  %v3374_v46 = vld [vmem:[%s4330_s7 + $0x170] ss:$56 sps:$4 sm:$0xff]  }
 0x24f   :  { %2310 = vmatprep.subr.bf16.mxu0 %v3301_v47  ;;  %v3377_v47 = vld [vmem:[%s4330_s7 + $0x178] ss:$56 sps:$4 sm:$0xff]  }
 0x252   :  { %2311 = vmatpush1.bf16.msra.mxu0 %v3299_v48  ;;  %v3382_v48 = vld [vmem:[%s4330_s7 + $0x1e4] ss:$56 sps:$4 sm:$0xff]  }
 0x253   :  { %2312 = vmatprep.subr.bf16.mxu0 %v3307_v50  ;;  %v3380_v50 = vld [vmem:[%s4330_s7 + $0x1e0] ss:$56 sps:$4 sm:$0xff]  }
 0x256   :  { %2313 = vmatpush1.bf16.msra.mxu0 %v3305_v52  ;;  %v3388_v52 = vld [vmem:[%s4330_s7 + $0x254] ss:$56 sps:$4 sm:$0xff]  }
 0x257   :  { %2380 = vmatprep.subr.bf16.mxu0 %v3313_v54  ;;  %v3386_v54 = vld [vmem:[%s4330_s7 + $0x250] ss:$56 sps:$4 sm:$0xff]  }
 0x30c   :  { %v1503_v57 = vpop.f32.mrb[16].mxu0 }
 0x30d   :  { %v1504_v58 = vadd.f32 %v2819_v56, %v1503_v57  ;;  %v3130_v59 = vpop.f32.mrb[17].mxu0  ;;  %v3389_v56 = vld [vmem:[%s4330_s7 + $0x258] ss:$56 sps:$4 sm:$0xff]   ;;  %v3394_v57 = vld [vmem:[%s4330_s7 + $0x2c4] ss:$56 sps:$4 sm:$0xff]  }
 0x30e   :  { %v1506_v60 = vpop.f32.mrb[18].mxu0  ;;  %v3392_v59 = vld [vmem:[%s4330_s7 + $0x2c0] ss:$56 sps:$4 sm:$0xff]  }
 0x30f   :  { %v1509_v61 = vmax.f32 %v1504_v58, 0.0  ;;  %v3131_v62 = vpop.f32.mrb[19].mxu0  ;;  %v3397_v58 = vld [vmem:[%s4330_s7 + $0x2cc] ss:$56 sps:$4 sm:$0xff]   ;;  %v3395_v60 = vld [vmem:[%s4330_s7 + $0x2c8] ss:$56 sps:$4 sm:$0xff]  }
 0x310   :  { %v3403_v62 = vld [vmem:[%s4330_s7 + $0x33c] ss:$56 sps:$4 sm:$0xff]  }
 0x311   :  { %v4022_v1 = vpack.c.bf16 %v1509_v61, %v1509_v61  ;;  %v3400_v61 = vld [vmem:[%s4330_s7 + $0x334] ss:$56 sps:$4 sm:$0xff]  }
 0x313   :  { %2290 = vmatmul.mubr.bf16.vlgmr.msra.gmra.mrb[16].mxu1 %v4022_v1  ;;  %2331 = vmatmul.mubr.bf16.vlgmr.msra.gmra.mrb[20].mxu0 %v4022_v1 }
 0x314   :  { %2340 = vmatpush1.bf16.msra.mxu1 %v3308_v63  ;;  %2381 = vmatpush1.bf16.msra.mxu0 %v3311_v0  ;;  %v3398_v63 = vld [vmem:[%s4330_s7 + $0x330] ss:$56 sps:$4 sm:$0xff]  }
 0x315   :  { %2341 = vmatprep.subr.bf16.mxu1 %v3316_v2  ;;  %2382 = vmatprep.subr.bf16.mxu0 %v3319_v3  ;;  %v3401_v0 = vld [vmem:[%s4330_s7 + $0x338] ss:$56 sps:$4 sm:$0xff]   ;;  %v3406_v2 = vld [vmem:[%s4330_s7 + $0x34] ss:$56 sps:$4 sm:$0xff]  }
 0x316   :  { %2371 = vmatprep.mubr.bf16.mxu1 %v3455_v55  ;;  %2412 = vmatprep.mubr.bf16.mxu0 %v3455_v55  ;;  %v3404_v3 = vld [vmem:[%s4330_s7 + $0x30] ss:$56 sps:$4 sm:$0xff]  }
 0x318   :  { %2342 = vmatpush1.bf16.msra.mxu1 %v3314_v4  ;;  %2383 = vmatpush1.bf16.msra.mxu0 %v3317_v5  ;;  %v3409_v4 = vld [vmem:[%s4330_s7 + $0xa4] ss:$56 sps:$4 sm:$0xff]   ;;  %v3407_v5 = vld [vmem:[%s4330_s7 + $0xa0] ss:$56 sps:$4 sm:$0xff]  }
 0x319   :  { %2343 = vmatprep.subr.bf16.mxu1 %v3322_v6  ;;  %2384 = vmatprep.subr.bf16.mxu0 %v3325_v7  ;;  %v3412_v6 = vld [vmem:[%s4330_s7 + $0x114] ss:$56 sps:$4 sm:$0xff]   ;;  %v3410_v7 = vld [vmem:[%s4330_s7 + $0x110] ss:$56 sps:$4 sm:$0xff]  }
 0x31c   :  { %2344 = vmatpush1.bf16.msra.mxu1 %v3320_v8  ;;  %2385 = vmatpush1.bf16.msra.mxu0 %v3323_v9  ;;  %v3415_v8 = vld [vmem:[%s4330_s7 + $0x184] ss:$56 sps:$4 sm:$0xff]   ;;  %v3418_v9 = vld [vmem:[%s4330_s7 + $0x1f4] ss:$56 sps:$4 sm:$0xff]  }
 0x31d   :  { %2345 = vmatprep.subr.bf16.mxu1 %v3328_v10  ;;  %2386 = vmatprep.subr.bf16.mxu0 %v3331_v11  ;;  %v3416_v10 = vld [vmem:[%s4330_s7 + $0x1f0] ss:$56 sps:$4 sm:$0xff]   ;;  %v3421_v11 = vld [vmem:[%s4330_s7 + $0x264] ss:$56 sps:$4 sm:$0xff]  }
 0x320   :  { %2346 = vmatpush1.bf16.msra.mxu1 %v3326_v12  ;;  %2387 = vmatpush1.bf16.msra.mxu0 %v3329_v13  ;;  %v3419_v12 = vld [vmem:[%s4330_s7 + $0x260] ss:$56 sps:$4 sm:$0xff]   ;;  %v3424_v13 = vld [vmem:[%s4330_s7 + $0x2d4] ss:$56 sps:$4 sm:$0xff]  }
 0x321   :  { %2347 = vmatprep.subr.bf16.mxu1 %v3334_v14  ;;  %2388 = vmatprep.subr.bf16.mxu0 %v3337_v15  ;;  %v3422_v14 = vld [vmem:[%s4330_s7 + $0x2d0] ss:$56 sps:$4 sm:$0xff]   ;;  %v3427_v15 = vld [vmem:[%s4330_s7 + $0x344] ss:$56 sps:$4 sm:$0xff]  }
 0x324   :  { %2348 = vmatpush1.bf16.msra.mxu1 %v3332_v16  ;;  %2389 = vmatpush1.bf16.msra.mxu0 %v3335_v17  ;;  %v3425_v16 = vld [vmem:[%s4330_s7 + $0x340] ss:$56 sps:$4 sm:$0xff]  }
 0x325   :  { %2349 = vmatprep.subr.bf16.mxu1 %v3340_v18  ;;  %2390 = vmatprep.subr.bf16.mxu0 %v3343_v19 }
 0x328   :  { %2350 = vmatpush1.bf16.msra.mxu1 %v3338_v20  ;;  %2391 = vmatpush1.bf16.msra.mxu0 %v3341_v21 }
 0x329   :  { %2351 = vmatprep.subr.bf16.mxu1 %v3346_v22  ;;  %2392 = vmatprep.subr.bf16.mxu0 %v3349_v23 }
 0x32c   :  { %2352 = vmatpush1.bf16.msra.mxu1 %v3344_v24  ;;  %2393 = vmatpush1.bf16.msra.mxu0 %v3347_v25 }
 0x32d   :  { %2353 = vmatprep.subr.bf16.mxu1 %v3352_v26  ;;  %2394 = vmatprep.subr.bf16.mxu0 %v3355_v27 }
 0x330   :  { %2354 = vmatpush1.bf16.msra.mxu1 %v3350_v28  ;;  %2395 = vmatpush1.bf16.msra.mxu0 %v3353_v29 }
 0x331   :  { %2421 = vmatprep.subr.bf16.mxu1 %v3358_v30  ;;  %2462 = vmatprep.subr.bf16.mxu0 %v3361_v31 }
 0x333   :  { %2372 = vmatmul.mubr.bf16.vlgmr.msra.gmra.mrb[20].mxu1 %v4022_v1  ;;  %2413 = vmatmul.mubr.bf16.vlgmr.msra.gmra.mrb[24].mxu0 %v4022_v1 }
 0x334   :  { %2422 = vmatpush1.bf16.msra.mxu1 %v3356_v33  ;;  %2463 = vmatpush1.bf16.msra.mxu0 %v3359_v34 }
 0x335   :  { %2423 = vmatprep.subr.bf16.mxu1 %v3364_v35  ;;  %2464 = vmatprep.subr.bf16.mxu0 %v3367_v36 }
 0x336   :  { %2453 = vmatprep.mubr.bf16.mxu1 %v3455_v55  ;;  %2494 = vmatprep.mubr.bf16.mxu0 %v3455_v55 }
 0x338   :  { %2424 = vmatpush1.bf16.msra.mxu1 %v3362_v37  ;;  %2465 = vmatpush1.bf16.msra.mxu0 %v3365_v38 }
 0x339   :  { %2425 = vmatprep.subr.bf16.mxu1 %v3370_v39  ;;  %2466 = vmatprep.subr.bf16.mxu0 %v3373_v40 }
 0x33c   :  { %2426 = vmatpush1.bf16.msra.mxu1 %v3368_v42  ;;  %2467 = vmatpush1.bf16.msra.mxu0 %v3371_v43 }
 0x33d   :  { %2427 = vmatprep.subr.bf16.mxu1 %v3376_v44  ;;  %2468 = vmatprep.subr.bf16.mxu0 %v3379_v45 }
 0x340   :  { %2428 = vmatpush1.bf16.msra.mxu1 %v3374_v46  ;;  %2469 = vmatpush1.bf16.msra.mxu0 %v3377_v47 }
 0x341   :  { %2429 = vmatprep.subr.bf16.mxu1 %v3382_v48  ;;  %2470 = vmatprep.subr.bf16.mxu0 %v3385_v49 }
 0x344   :  { %2430 = vmatpush1.bf16.msra.mxu1 %v3380_v50  ;;  %2471 = vmatpush1.bf16.msra.mxu0 %v3383_v51 }
 0x345   :  { %2431 = vmatprep.subr.bf16.mxu1 %v3388_v52  ;;  %2472 = vmatprep.subr.bf16.mxu0 %v3391_v53 }
 0x348   :  { %2432 = vmatpush1.bf16.msra.mxu1 %v3386_v54  ;;  %2473 = vmatpush1.bf16.msra.mxu0 %v3389_v56 }
 0x349   :  { %2433 = vmatprep.subr.bf16.mxu1 %v3394_v57  ;;  %2474 = vmatprep.subr.bf16.mxu0 %v3397_v58 }
 0x34c   :  { %2434 = vmatpush1.bf16.msra.mxu1 %v3392_v59  ;;  %2475 = vmatpush1.bf16.msra.mxu0 %v3395_v60 }
 0x34d   :  { %2435 = vmatprep.subr.bf16.mxu1 %v3400_v61  ;;  %2476 = vmatprep.subr.bf16.mxu0 %v3403_v62 }
 0x350   :  { %2436 = vmatpush1.bf16.msra.mxu1 %v3398_v63  ;;  %2477 = vmatpush1.bf16.msra.mxu0 %v3401_v0 }
 0x351   :  { %2503 = vmatprep.subr.bf16.mxu1 %v3406_v2 }
 0x353   :  { %2454 = vmatmul.mubr.bf16.vlgmr.msra.gmra.mrb[24].mxu1 %v4022_v1  ;;  %2495 = vmatmul.mubr.bf16.vlgmr.msra.gmra.mrb[28].mxu0 %v4022_v1 }
 0x354   :  { %2504 = vmatpush1.bf16.msra.mxu1 %v3404_v3  ;;  %2535 = vmatprep.mubr.bf16.mxu1 %v3455_v55  ;;  %v3413_v55 = vld [vmem:[%s4330_s7 + $0x180] ss:$56 sps:$4 sm:$0xff]  }
 0x355   :  { %2505 = vmatprep.subr.bf16.mxu1 %v3409_v4 }
 0x358   :  { %2506 = vmatpush1.bf16.msra.mxu1 %v3407_v5 }
 0x359   :  { %2507 = vmatprep.subr.bf16.mxu1 %v3412_v6 }
 0x35c   :  { %2508 = vmatpush1.bf16.msra.mxu1 %v3410_v7 }
 0x35d   :  { %2509 = vmatprep.subr.bf16.mxu1 %v3415_v8 }
 0x360   :  { %2510 = vmatpush1.bf16.msra.mxu1 %v3413_v55 }
 0x361   :  { %2511 = vmatprep.subr.bf16.mxu1 %v3418_v9 }
 0x364   :  { %2512 = vmatpush1.bf16.msra.mxu1 %v3416_v10 }
 0x365   :  { %2513 = vmatprep.subr.bf16.mxu1 %v3421_v11 }
 0x368   :  { %2514 = vmatpush1.bf16.msra.mxu1 %v3419_v12 }
 0x369   :  { %2515 = vmatprep.subr.bf16.mxu1 %v3424_v13 }
 0x36c   :  { %2516 = vmatpush1.bf16.msra.mxu1 %v3422_v14 }
 0x36d   :  { %2517 = vmatprep.subr.bf16.mxu1 %v3427_v15 }
 0x370   :  { %2518 = vmatpush1.bf16.msra.mxu1 %v3425_v16 }
 0x373   :  { %2536 = vmatmul.mubr.bf16.vlgmr.msra.gmra.mrb[28].mxu1 %v4022_v1 }
 0x374   :  { %3439 = shalt.err (!%p3436_p4)
}
 0x375   :  { %s3440_s11 = scalar_lea.hbm %s4332_s9, 32 }
 0x376   :  { %p3441_p5 = scmp.ne.s32.totalorder %s4332_s9, %s3440_s11  ;;  %p3444_p6 = scmp.lt.u32.totalorder %s3440_s11, %s4332_s9 }
 0x378   :  { %p3446_p7 = pnand %p3444_p6, %p3441_p5 }
 0x37a   :  { %3449 = shalt.err (!%p3446_p7)
}
 0x37b   :  { %2688 = dma.vmem_to_hbm [thread:$0]  %s2686_s27, 32, %s4332_s9, [#allocation3]   ;;  %v1629_v1 = vsub.s32 0, %v3605_v32  ;;  %v1637_v17 = vsub.s32 2, %v3605_v32  ;;  %v1623_v18 = vld [vmem:[%s4331_s8] sm:$0xff]  ;;  %v1633_v19 = vsub.s32 1, %v3605_v32 }
 0x37c   :  { %v1641_v20 = vsub.s32 3, %v3605_v32  ;;  %v1645_v48 = vsub.s32 4, %v3605_v32  ;;  %v1653_v49 = vsub.s32 6, %v3605_v32  ;;  %v1649_v50 = vsub.s32 5, %v3605_v32 }
 0x37d   :  { %v1630_v21 = vrot.slane %v1623_v18, %v1629_v1  ;;  %v1638_v22 = vrot.slane %v1623_v18, %v1637_v17  ;;  %v1634_v23 = vrot.slane %v1623_v18, %v1633_v19  ;;  %v1657_v51 = vsub.s32 7, %v3605_v32 }
 0x37e   :  { %v1642_v24 = vrot.slane %v1623_v18, %v1641_v20  ;;  %v1646_v52 = vrot.slane %v1623_v18, %v1645_v48  ;;  %v1654_v53 = vrot.slane %v1623_v18, %v1653_v49  ;;  %v1650_v54 = vrot.slane %v1623_v18, %v1649_v50 }
 0x37f   :  { %v1658_v56 = vrot.slane %v1623_v18, %v1657_v51  ;;  %v1624_v18 = vld [vmem:[%s4331_s8 + $0x8] sm:$0x3f] }
 0x3e6   :  { %v2291_v25 = vpop.f32.mrb[16].mxu1  ;;  %v2332_v26 = vpop.f32.mrb[20].mxu0 }
 0x3e7   :  { %v2292_v27 = vadd.f32 %v2291_v25, %v1630_v21  ;;  %v2333_v28 = vadd.f32 %v2332_v26, %v1638_v22  ;;  %v2293_v29 = vpop.f32.mrb[17].mxu1  ;;  %v2334_v30 = vpop.f32.mrb[21].mxu0  ;;  %v1662_v21 = vrot.slane %v1624_v18, %v1629_v1  ;;  %v1670_v22 = vrot.slane %v1624_v18, %v1637_v17 }
 0x3e8   :  { %v2294_v31 = vadd.f32 %v2293_v29, %v1634_v23  ;;  %v2335_v33 = vadd.f32 %v2334_v30, %v1642_v24  ;;  %v2295_v34 = vpop.f32.mrb[18].mxu1  ;;  %v2336_v35 = vpop.f32.mrb[22].mxu0  ;;  %v1666_v23 = vrot.slane %v1624_v18, %v1633_v19  ;;  %v1674_v24 = vrot.slane %v1624_v18, %v1641_v20 }
 0x3e9   :  { %v2544_v36 = vmax.f32 %v2292_v27, 0.0  ;;  %v2546_v37 = vmax.f32 %v2333_v28, 0.0  ;;  %v2296_v38 = vpop.f32.mrb[19].mxu1  ;;  %v2337_v39 = vpop.f32.mrb[23].mxu0 }
 0x3ea   :  { %v2545_v40 = vmax.f32 %v2294_v31, 0.0  ;;  %v2547_v42 = vmax.f32 %v2335_v33, 0.0 }
 0x3ec   :  { %v2934_v43 = vpack.c.bf16 %v2545_v40, %v2544_v36  ;;  %v2935_v44 = vpack.c.bf16 %v2547_v42, %v2546_v37 }
 0x3ee   :  { %v2596_v45 = vrot.slane %v2934_v43, %v3620_v41  ;;  %v2603_v46 = vrot.slane %v2935_v44, %v3620_v41  ;;  %v1678_v43 = vrot.slane %v1624_v18, %v1645_v48  ;;  %v1682_v44 = vrot.slane %v1624_v18, %v1649_v50 }
 0x3f0   :  { %v2618_v47 = vcombine.low %v2596_v45, %v2603_v46 }
 0x3f2   :  { %v2626_v14 = vrot.slane %v2618_v47, %v3620_v41 }
 0x406   :  { %v2373_v57 = vpop.f32.mrb[20].mxu1  ;;  %v2414_v58 = vpop.f32.mrb[24].mxu0 }
 0x407   :  { %v2374_v59 = vadd.f32 %v2373_v57, %v1646_v52  ;;  %v2415_v60 = vadd.f32 %v2414_v58, %v1654_v53  ;;  %v2375_v61 = vpop.f32.mrb[21].mxu1  ;;  %v2416_v62 = vpop.f32.mrb[25].mxu0 }
 0x408   :  { %v2376_v63 = vadd.f32 %v2375_v61, %v1650_v54  ;;  %v2417_v0 = vadd.f32 %v2416_v62, %v1658_v56  ;;  %v2377_v2 = vpop.f32.mrb[22].mxu1  ;;  %v2418_v3 = vpop.f32.mrb[26].mxu0 }
 0x409   :  { %v2548_v4 = vmax.f32 %v2374_v59, 0.0  ;;  %v2550_v5 = vmax.f32 %v2415_v60, 0.0  ;;  %v2378_v6 = vpop.f32.mrb[23].mxu1  ;;  %v2419_v7 = vpop.f32.mrb[27].mxu0 }
 0x40a   :  { %v2549_v8 = vmax.f32 %v2376_v63, 0.0  ;;  %v2551_v55 = vmax.f32 %v2417_v0, 0.0 }
 0x40c   :  { %v2936_v9 = vpack.c.bf16 %v2549_v8, %v2548_v4  ;;  %v2937_v10 = vpack.c.bf16 %v2551_v55, %v2550_v5 }
 0x40e   :  { %v2610_v11 = vrot.slane %v2936_v9, %v3620_v41  ;;  %v2617_v12 = vrot.slane %v2937_v10, %v3620_v41 }
 0x410   :  { %v2619_v13 = vcombine.low %v2610_v11, %v2617_v12 }
 0x412   :  { %v2633_v15 = vrot.slane %v2619_v13, %v3620_v41 }
 0x414   :  { %v2634_v16 = vcombine.low %v2626_v14, %v2633_v15 }
 0x416   :  { %2677 = vst [vmem:[%s4333_s10] sm:$0xff] %v2634_v16 }
 0x426   :  { %v2455_v25 = vpop.f32.mrb[24].mxu1  ;;  %v2496_v26 = vpop.f32.mrb[28].mxu0 }
 0x427   :  { %v2456_v27 = vadd.f32 %v2455_v25, %v1662_v21  ;;  %v2497_v28 = vadd.f32 %v2496_v26, %v1670_v22  ;;  %v2457_v29 = vpop.f32.mrb[25].mxu1  ;;  %v2498_v30 = vpop.f32.mrb[29].mxu0 }
 0x428   :  { %v2458_v31 = vadd.f32 %v2457_v29, %v1666_v23  ;;  %v2499_v33 = vadd.f32 %v2498_v30, %v1674_v24  ;;  %v2459_v34 = vpop.f32.mrb[26].mxu1  ;;  %v2500_v35 = vpop.f32.mrb[30].mxu0 }
 0x429   :  { %v2552_v1 = vmax.f32 %v2456_v27, 0.0  ;;  %v2554_v36 = vmax.f32 %v2497_v28, 0.0  ;;  %v2460_v37 = vpop.f32.mrb[27].mxu1  ;;  %v2501_v17 = vpop.f32.mrb[31].mxu0 }
 0x42a   :  { %v2553_v38 = vmax.f32 %v2458_v31, 0.0  ;;  %v2555_v39 = vmax.f32 %v2499_v33, 0.0 }
 0x42c   :  { %v2938_v19 = vpack.c.bf16 %v2553_v38, %v2552_v1  ;;  %v2939_v40 = vpack.c.bf16 %v2555_v39, %v2554_v36 }
 0x42e   :  { %v2644_v32 = vrot.slane %v2938_v19, %v3620_v41  ;;  %v2651_v20 = vrot.slane %v2939_v40, %v3620_v41 }
 0x430   :  { %v2659_v42 = vcombine.low %v2644_v32, %v2651_v20 }
 0x432   :  { %v2666_v58 = vrot.slane %v2659_v42, %v3620_v41 }
 0x446   :  { %v2537_v45 = vpop.f32.mrb[28].mxu1 }
 0x447   :  { %v2538_v46 = vadd.f32 %v2537_v45, %v1678_v43  ;;  %v2539_v47 = vpop.f32.mrb[29].mxu1 }
 0x448   :  { %v2540_v49 = vadd.f32 %v2539_v47, %v1682_v44  ;;  %v2541_v51 = vpop.f32.mrb[30].mxu1 }
 0x449   :  { %v2556_v52 = vmax.f32 %v2538_v46, 0.0  ;;  %v2542_v53 = vpop.f32.mrb[31].mxu1 }
 0x44a   :  { %v2557_v54 = vmax.f32 %v2540_v49, 0.0 }
 0x44c   :  { %v2940_v56 = vpack.c.bf16 %v2557_v54, %v2556_v52 }
 0x44e   :  { %v2658_v57 = vrot.slane %v2940_v56, %v3620_v41 }
 0x450   :  { %v2673_v59 = vrot.slane %v2658_v57, %v3620_v41 }
 0x452   :  { %v2674_v60 = vcombine.low %v2666_v58, %v2673_v59 }
 0x454   :  { %2678 = vst [vmem:[%s4333_s10 + $0x8] sm:$0x3f] %v2674_v60 }
 0x455   :  { %3450 = dma.done.wait [#allocation3], 32  }
 0x456   :  { %3451 = vsyncadd [#allocation3], 4294967264 }
 0x457   :  { %2696 = vsyncpa [#allocation3], 1 }

// kernel: ae_forward.8
= control target key start
LH: loop header
LB: loop body
LE: loop exit
PB: predicated region body
PF: predicated region fallthrough
CT: control target
= control target key end

     0   :  { %v730_v0 = vmov 0.0   ;;  %vm731_vm0 = vmmov 0   ;;  %v732_v3 = vmov 0   ;;  %vm130_vm1 = vcmask 523264   ;;  %s987_s3 = inlined_call_operand.vmem [shape: bf16[64,290], index: 3, kind: input, shape index: {}]   ;;  %s988_s0 = inlined_call_operand.vmem [shape: bf16[72,64], index: 0, kind: input, shape index: {}]   ;;  %s989_s1 = inlined_call_operand.vmem [shape: f32[72,1], index: 1, kind: input, shape index: {}]   ;;  %s990_s2 = inlined_call_operand.vmem [shape: f32[72,1], index: 2, kind: input, shape index: {}]   ;;  %s991_s4 = inlined_call_operand.vmem [shape: bf16[72,290], index: 4, kind: output, shape index: {}]  }
   0x1   :  { %676 = vmatprep.subr.bf16.mxu1 %v730_v0  ;;  %v709_v1 = vld [vmem:[%s987_s3 + $0x4] ss:$12 sps:$4 sm:$0xff]   ;;  %684 = vmatprep.mubr.msk.bf16.mxu1 %vm731_vm0, %v730_v0  ;;  %v711_v2 = vld [vmem:[%s987_s3 + $0x8] ss:$12 sps:$4 sm:$0xff]   ;;  %v712_v4 = vld [vmem:[%s987_s3] ss:$12 sps:$4 sm:$0xff]  }
   0x2   :  { %178 = vmatprep.mubr.bf16.mxu0 %v732_v3  ;;  %708 = vset.pattern.permute.xlu1 %v732_v3  ;;  %v713_v5 = vld [vmem:[%s987_s3 + $0x1c] ss:$12 sps:$4 sm:$0xff]   ;;  %v715_v6 = vld [vmem:[%s987_s3 + $0x20] ss:$12 sps:$4 sm:$0xff]   ;;  %v716_v7 = vld [vmem:[%s987_s3 + $0x18] ss:$12 sps:$4 sm:$0xff]  }
   0x3   :  { %146 = vmatprep.subr.bf16.mxu0 %v709_v1  ;;  %707 = vset.pattern.permute.xlu0 %v732_v3  ;;  %v717_v8 = vld [vmem:[%s987_s3 + $0x34] ss:$12 sps:$4 sm:$0xff]   ;;  %v719_v9 = vld [vmem:[%s987_s3 + $0x38] ss:$12 sps:$4 sm:$0xff]   ;;  %v720_v10 = vld [vmem:[%s987_s3 + $0x30] ss:$12 sps:$4 sm:$0xff]  }
   0x4   :  { %677 = vmatpush3.bf16.msra.mxu1 %v711_v2  ;;  %147 = vmatpush1.bf16.msra.mxu0 %v712_v4  ;;  %v721_v11 = vld [vmem:[%s987_s3 + $0x4c] ss:$12 sps:$4 sm:$0xff]   ;;  %v723_v12 = vld [vmem:[%s987_s3 + $0x50] ss:$12 sps:$4 sm:$0xff]   ;;  %v724_v13 = vld [vmem:[%s987_s3 + $0x48] ss:$12 sps:$4 sm:$0xff]  }
   0x5   :  { %678 = vmatprep.subr.bf16.mxu1 %v730_v0  ;;  %148 = vmatprep.subr.bf16.mxu0 %v713_v5  ;;  %v725_v14 = vld [vmem:[%s988_s0] sm:$0xff]   ;;  %v301_v15 = vld [vmem:[%s989_s1 + $0x10] sm:$0xff]  ;;  %v302_v17 = vld [vmem:[%s989_s1 + $0x18] sm:$0xff]  ;;  %vm582_vm2 = vcmask 273408  }
   0x6   :  { %v299_v16 = vld [vmem:[%s989_s1] sm:$0xff]  ;;  %320 = vperm.xlu1 %708, %v301_v15   ;;  %v300_v18 = vld [vmem:[%s989_s1 + $0x8] sm:$0xff]  ;;  %v306_v22 = vld [vmem:[%s989_s1 + $0x38] sm:$0xff] }
   0x7   :  { %310 = vperm.xlu0 %707, %v299_v16   ;;  %v304_v19 = vld [vmem:[%s989_s1 + $0x28] sm:$0xff]  ;;  %v303_v21 = vld [vmem:[%s989_s1 + $0x20] sm:$0xff]  ;;  %v305_v23 = vld [vmem:[%s989_s1 + $0x30] sm:$0xff] }
   0x8   :  { %679 = vmatpush3.bf16.msra.mxu1 %v715_v6  ;;  %149 = vmatpush1.bf16.msra.mxu0 %v716_v7  ;;  %v726_v20 = vld [vmem:[%s988_s0 + $0x8] sm:$0xff]   ;;  %v380_v24 = vld [vmem:[%s990_s2] sm:$0xff]  ;;  %v727_v25 = vld [vmem:[%s988_s0 + $0x10] sm:$0xff]  }
   0x9   :  { %680 = vmatprep.subr.bf16.mxu1 %v730_v0  ;;  %150 = vmatprep.subr.bf16.mxu0 %v717_v8  ;;  %v307_v26 = vld [vmem:[%s989_s1 + $0x40] sm:$0xff]  ;;  %v382_v27 = vld [vmem:[%s990_s2 + $0x10] sm:$0xff]  ;;  %v381_v28 = vld [vmem:[%s990_s2 + $0x8] sm:$0xff] }
   0xa   :  { %325 = vperm.xlu1 %708, %v302_v17   ;;  %v384_v29 = vld [vmem:[%s990_s2 + $0x20] sm:$0xff]  ;;  %v728_v30 = vld [vmem:[%s988_s0 + $0x18] sm:$0xff]   ;;  %v386_v32 = vld [vmem:[%s990_s2 + $0x30] sm:$0xff] }
   0xb   :  { %315 = vperm.xlu0 %707, %v300_v18   ;;  %v383_v31 = vld [vmem:[%s990_s2 + $0x18] sm:$0xff]  ;;  %v385_v33 = vld [vmem:[%s990_s2 + $0x28] sm:$0xff]  ;;  %v388_v34 = vld [vmem:[%s990_s2 + $0x40] sm:$0xff] }
   0xc   :  { %681 = vmatpush3.bf16.msra.mxu1 %v719_v9  ;;  %151 = vmatpush1.bf16.msra.mxu0 %v720_v10  ;;  %v729_v35 = vld [vmem:[%s988_s0 + $0x20] ss:$0 sps:$4 sm:$0xff]   ;;  %v387_v36 = vld [vmem:[%s990_s2 + $0x38] sm:$0xff] }
   0xd   :  { %682 = vmatprep.subr.bf16.mxu1 %v730_v0  ;;  %152 = vmatprep.subr.bf16.mxu0 %v721_v11 }
   0xe   :  { %335 = vperm.xlu1 %708, %v304_v19  }
   0xf   :  { %330 = vperm.xlu0 %707, %v303_v21  }
  0x10   :  { %683 = vmatpush3.bf16.msra.mxu1 %v723_v12  ;;  %153 = vmatpush1.bf16.msra.mxu0 %v724_v13 }
  0x12   :  { %345 = vperm.xlu1 %708, %v306_v22  }
  0x13   :  { %685 = vmatmul.mubr.msk.bf16.vlgmr.msra.gmra.mrb[0].mxu1 %vm130_vm1, %v725_v14  ;;  %621 = vmatmul.mubr.msk.bf16.vlgmr.msra.gmra.mrb[0].mxu0 %vm130_vm1, %v725_v14 }
  0x14   :  { %688 = vmatprep.mubr.msk.bf16.mxu1 %vm731_vm0, %v730_v0  ;;  %188 = vmatprep.mubr.bf16.mxu0 %v732_v3 }
  0x15   :  { %340 = vperm.xlu0 %707, %v305_v23  }
  0x16   :  { %391 = vperm.xlu1 %708, %v380_v24  }
  0x19   :  { %350 = vperm.xlu0 %707, %v307_v26  }
  0x1a   :  { %401 = vperm.xlu1 %708, %v382_v27  }
  0x1b   :  { %689 = vmatmul.mubr.msk.bf16.gmra.mrb[4].mxu1 %vm130_vm1, %v726_v20  ;;  %622 = vmatmul.mubr.msk.bf16.gmra.mrb[4].mxu0 %vm130_vm1, %v726_v20 }
  0x1c   :  { %692 = vmatprep.mubr.msk.bf16.mxu1 %vm731_vm0, %v730_v0  ;;  %198 = vmatprep.mubr.bf16.mxu0 %v732_v3 }
  0x1d   :  { %396 = vperm.xlu0 %707, %v381_v28  }
  0x1e   :  { %411 = vperm.xlu1 %708, %v384_v29  }
  0x21   :  { %406 = vperm.xlu0 %707, %v383_v31  }
  0x22   :  { %421 = vperm.xlu1 %708, %v386_v32  }
  0x23   :  { %693 = vmatmul.mubr.msk.bf16.gmra.mrb[8].mxu1 %vm130_vm1, %v727_v25  ;;  %623 = vmatmul.mubr.msk.bf16.gmra.mrb[8].mxu0 %vm130_vm1, %v727_v25 }
  0x24   :  { %696 = vmatprep.mubr.msk.bf16.mxu1 %vm731_vm0, %v730_v0  ;;  %208 = vmatprep.mubr.bf16.mxu0 %v732_v3 }
  0x25   :  { %416 = vperm.xlu0 %707, %v385_v33  }
  0x26   :  { %431 = vperm.xlu1 %708, %v388_v34  }
  0x29   :  { %426 = vperm.xlu0 %707, %v387_v36  }
  0x2b   :  { %697 = vmatmul.mubr.msk.bf16.gmra.mrb[12].mxu1 %vm130_vm1, %v728_v30  ;;  %624 = vmatmul.mubr.msk.bf16.gmra.mrb[12].mxu0 %vm130_vm1, %v728_v30 }
  0x2c   :  { %700 = vmatprep.mubr.msk.bf16.mxu1 %vm731_vm0, %v730_v0  ;;  %218 = vmatprep.mubr.bf16.mxu0 %v732_v3 }
  0x33   :  { %701 = vmatmul.mubr.msk.bf16.gmra.mrb[16].mxu1 %vm130_vm1, %v729_v35  ;;  %625 = vmatmul.mubr.msk.bf16.gmra.mrb[16].mxu0 %vm130_vm1, %v729_v35 }
  0x85   :  { %v321_v38 = vpop.permute.xlu1 %320 }
  0x86   :  { %v311_v37 = vpop.permute.xlu0 %310 }
  0x89   :  { %v894_v40 = vpop.permute.xlu1 %325 }
  0x8a   :  { %v316_v39 = vpop.permute.xlu0 %315 }
  0x8d   :  { %v898_v42 = vpop.permute.xlu1 %335 }
  0x8e   :  { %v896_v41 = vpop.permute.xlu0 %330 }
  0x91   :  { %v902_v44 = vpop.permute.xlu1 %345 }
  0x94   :  { %v900_v43 = vpop.permute.xlu0 %340 }
  0x95   :  { %v392_v46 = vpop.permute.xlu1 %391 }
  0x98   :  { %v904_v45 = vpop.permute.xlu0 %350 }
  0x99   :  { %v402_v9 = vpop.permute.xlu1 %401 }
  0x9c   :  { %v397_v59 = vpop.permute.xlu0 %396 }
  0xa0   :  { %v407_v27 = vpop.permute.xlu0 %406 }
  0xe6   :  { %v261_v47 = vpop.f32.mrb[0].mxu1  ;;  %v180_v49 = vpop.f32.mrb[0].mxu0 }
  0xe7   :  { %v355_v48 = vmul.f32 %v311_v37, %v261_v47  ;;  %v686_v50 = vpop.f32.mrb[1].mxu1  ;;  %v353_v51 = vmul.f32 %v311_v37, %v180_v49  ;;  %v182_v52 = vpop.f32.mrb[1].mxu0 }
  0xe8   :  { %v264_v53 = vpop.f32.mrb[2].mxu1  ;;  %v354_v55 = vmul.f32 %v311_v37, %v182_v52  ;;  %v184_v57 = vpop.f32.mrb[2].mxu0 }
  0xe9   :  { %v436_v54 = vadd.f32 %v392_v46, %v355_v48  ;;  %v358_v56 = vmul.f32 %v316_v39, %v264_v53  ;;  %v687_v58 = vpop.f32.mrb[3].mxu1  ;;  %v434_v60 = vadd.f32 %v392_v46, %v353_v51  ;;  %v356_v61 = vmul.f32 %v316_v39, %v184_v57  ;;  %v186_v62 = vpop.f32.mrb[3].mxu0 }
  0xea   :  { %v435_v0 = vadd.f32 %v392_v46, %v354_v55  ;;  %v357_v2 = vmul.f32 %v316_v39, %v186_v62  ;;  %v412_v47 = vpop.permute.xlu1 %411 }
  0xeb   :  { %v463_v63 = vmax.f32 %v436_v54, 0.0  ;;  %v439_v1 = vadd.f32 %v397_v59, %v358_v56  ;;  %v461_v3 = vmax.f32 %v434_v60, 0.0  ;;  %v437_v4 = vadd.f32 %v397_v59, %v356_v61 }
  0xec   :  { %v462_v6 = vmax.f32 %v435_v0, 0.0  ;;  %v438_v8 = vadd.f32 %v397_v59, %v357_v2  ;;  %v417_v0 = vpop.permute.xlu0 %416 }
  0xed   :  { %v650_v5 = vpack.c.bf16 %v463_v63, %v463_v63  ;;  %v466_v7 = vmax.f32 %v439_v1, 0.0  ;;  %v464_v10 = vmax.f32 %v437_v4, 0.0 }
  0xee   :  { %v269_v11 = vpop.f32.mrb[4].mxu1  ;;  %v649_v12 = vpack.c.bf16 %v462_v6, %v461_v3  ;;  %v465_v14 = vmax.f32 %v438_v8, 0.0  ;;  %v190_v16 = vpop.f32.mrb[4].mxu0 }
  0xef   :  { %583 = vst.msk [vmem:[%s991_s4 + $0x8] sm:$0xf] %vm582_vm2, %v650_v5  ;;  %v652_v13 = vpack.c.bf16 %v466_v7, %v466_v7  ;;  %v361_v15 = vmul.f32 %v321_v38, %v269_v11  ;;  %v690_v17 = vpop.f32.mrb[5].mxu1  ;;  %v359_v18 = vmul.f32 %v321_v38, %v190_v16  ;;  %v192_v19 = vpop.f32.mrb[5].mxu0 }
  0xf0   :  { %v272_v20 = vpop.f32.mrb[6].mxu1  ;;  %581 = vst [vmem:[%s991_s4] sm:$0xff] %v649_v12  ;;  %v651_v21 = vpack.c.bf16 %v465_v14, %v464_v10  ;;  %v360_v23 = vmul.f32 %v321_v38, %v192_v19  ;;  %v194_v25 = vpop.f32.mrb[6].mxu0 }
  0xf1   :  { %585 = vst.msk [vmem:[%s991_s4 + $0x14] sm:$0xf] %vm582_vm2, %v652_v13  ;;  %v442_v22 = vadd.f32 %v402_v9, %v361_v15  ;;  %v364_v24 = vmul.f32 %v894_v40, %v272_v20  ;;  %v691_v26 = vpop.f32.mrb[7].mxu1  ;;  %v440_v28 = vadd.f32 %v402_v9, %v359_v18  ;;  %v362_v29 = vmul.f32 %v894_v40, %v194_v25  ;;  %v196_v30 = vpop.f32.mrb[7].mxu0 }
  0xf2   :  { %584 = vst [vmem:[%s991_s4 + $0xc] sm:$0xff] %v651_v21  ;;  %v441_v32 = vadd.f32 %v402_v9, %v360_v23  ;;  %v363_v34 = vmul.f32 %v894_v40, %v196_v30  ;;  %v422_v13 = vpop.permute.xlu1 %421  ;;  %v427_v30 = vpop.permute.xlu0 %426 }
  0xf3   :  { %v469_v31 = vmax.f32 %v442_v22, 0.0  ;;  %v445_v33 = vadd.f32 %v407_v27, %v364_v24  ;;  %v467_v35 = vmax.f32 %v440_v28, 0.0  ;;  %v443_v36 = vadd.f32 %v407_v27, %v362_v29 }
  0xf4   :  { %v468_v38 = vmax.f32 %v441_v32, 0.0  ;;  %v444_v46 = vadd.f32 %v407_v27, %v363_v34 }
  0xf5   :  { %v654_v37 = vpack.c.bf16 %v469_v31, %v469_v31  ;;  %v472_v39 = vmax.f32 %v445_v33, 0.0  ;;  %v470_v48 = vmax.f32 %v443_v36, 0.0 }
  0xf6   :  { %v277_v49 = vpop.f32.mrb[8].mxu1  ;;  %v653_v50 = vpack.c.bf16 %v468_v38, %v467_v35  ;;  %v471_v52 = vmax.f32 %v444_v46, 0.0  ;;  %v200_v40 = vpop.f32.mrb[8].mxu0 }
  0xf7   :  { %587 = vst.msk [vmem:[%s991_s4 + $0x20] sm:$0xf] %vm582_vm2, %v654_v37  ;;  %v656_v51 = vpack.c.bf16 %v472_v39, %v472_v39  ;;  %v367_v53 = vmul.f32 %v896_v41, %v277_v49  ;;  %v694_v54 = vpop.f32.mrb[9].mxu1  ;;  %v365_v55 = vmul.f32 %v896_v41, %v200_v40  ;;  %v202_v56 = vpop.f32.mrb[9].mxu0 }
  0xf8   :  { %v280_v57 = vpop.f32.mrb[10].mxu1  ;;  %586 = vst [vmem:[%s991_s4 + $0x18] sm:$0xff] %v653_v50  ;;  %v655_v58 = vpack.c.bf16 %v471_v52, %v470_v48  ;;  %v366_v60 = vmul.f32 %v896_v41, %v202_v56  ;;  %v204_v62 = vpop.f32.mrb[10].mxu0 }
  0xf9   :  { %589 = vst.msk [vmem:[%s991_s4 + $0x2c] sm:$0xf] %vm582_vm2, %v656_v51  ;;  %v448_v59 = vadd.f32 %v412_v47, %v367_v53  ;;  %v370_v61 = vmul.f32 %v898_v42, %v280_v57  ;;  %v695_v63 = vpop.f32.mrb[11].mxu1  ;;  %v446_v1 = vadd.f32 %v412_v47, %v365_v55  ;;  %v368_v2 = vmul.f32 %v898_v42, %v204_v62  ;;  %v206_v3 = vpop.f32.mrb[11].mxu0 }
  0xfa   :  { %588 = vst [vmem:[%s991_s4 + $0x24] sm:$0xff] %v655_v58  ;;  %v447_v5 = vadd.f32 %v412_v47, %v366_v60  ;;  %v369_v7 = vmul.f32 %v898_v42, %v206_v3  ;;  %v432_v49 = vpop.permute.xlu1 %431 }
  0xfb   :  { %v475_v4 = vmax.f32 %v448_v59, 0.0  ;;  %v451_v6 = vadd.f32 %v417_v0, %v370_v61  ;;  %v473_v8 = vmax.f32 %v446_v1, 0.0  ;;  %v449_v41 = vadd.f32 %v417_v0, %v368_v2 }
  0xfc   :  { %v474_v10 = vmax.f32 %v447_v5, 0.0  ;;  %v450_v12 = vadd.f32 %v417_v0, %v369_v7 }
  0xfd   :  { %v658_v9 = vpack.c.bf16 %v475_v4, %v475_v4  ;;  %v478_v11 = vmax.f32 %v451_v6, 0.0  ;;  %v476_v14 = vmax.f32 %v449_v41, 0.0 }
  0xfe   :  { %v285_v15 = vpop.f32.mrb[12].mxu1  ;;  %v657_v16 = vpack.c.bf16 %v474_v10, %v473_v8  ;;  %v477_v18 = vmax.f32 %v450_v12, 0.0  ;;  %v210_v42 = vpop.f32.mrb[12].mxu0 }
  0xff   :  { %591 = vst.msk [vmem:[%s991_s4 + $0x38] sm:$0xf] %vm582_vm2, %v658_v9  ;;  %v660_v17 = vpack.c.bf16 %v478_v11, %v478_v11  ;;  %v373_v19 = vmul.f32 %v900_v43, %v285_v15  ;;  %v698_v20 = vpop.f32.mrb[13].mxu1  ;;  %v371_v21 = vmul.f32 %v900_v43, %v210_v42  ;;  %v212_v22 = vpop.f32.mrb[13].mxu0 }
 0x100   :  { %v288_v23 = vpop.f32.mrb[14].mxu1  ;;  %590 = vst [vmem:[%s991_s4 + $0x30] sm:$0xff] %v657_v16  ;;  %v659_v24 = vpack.c.bf16 %v477_v18, %v476_v14  ;;  %v372_v26 = vmul.f32 %v900_v43, %v212_v22  ;;  %v214_v28 = vpop.f32.mrb[14].mxu0 }
 0x101   :  { %593 = vst.msk [vmem:[%s991_s4 + $0x44] sm:$0xf] %vm582_vm2, %v660_v17  ;;  %v454_v25 = vadd.f32 %v422_v13, %v373_v19  ;;  %v376_v27 = vmul.f32 %v902_v44, %v288_v23  ;;  %v699_v29 = vpop.f32.mrb[15].mxu1  ;;  %v452_v31 = vadd.f32 %v422_v13, %v371_v21  ;;  %v374_v32 = vmul.f32 %v902_v44, %v214_v28  ;;  %v216_v33 = vpop.f32.mrb[15].mxu0 }
 0x102   :  { %592 = vst [vmem:[%s991_s4 + $0x3c] sm:$0xff] %v659_v24  ;;  %v453_v35 = vadd.f32 %v422_v13, %v372_v26  ;;  %v375_v37 = vmul.f32 %v902_v44, %v216_v33 }
 0x103   :  { %v481_v34 = vmax.f32 %v454_v25, 0.0  ;;  %v457_v36 = vadd.f32 %v427_v30, %v376_v27  ;;  %v479_v38 = vmax.f32 %v452_v31, 0.0  ;;  %v455_v43 = vadd.f32 %v427_v30, %v374_v32 }
 0x104   :  { %v480_v46 = vmax.f32 %v453_v35, 0.0  ;;  %v456_v48 = vadd.f32 %v427_v30, %v375_v37 }
 0x105   :  { %v662_v39 = vpack.c.bf16 %v481_v34, %v481_v34  ;;  %v484_v47 = vmax.f32 %v457_v36, 0.0  ;;  %v482_v50 = vmax.f32 %v455_v43, 0.0 }
 0x106   :  { %v293_v51 = vpop.f32.mrb[16].mxu1  ;;  %v661_v52 = vpack.c.bf16 %v480_v46, %v479_v38  ;;  %v483_v40 = vmax.f32 %v456_v48, 0.0  ;;  %v220_v44 = vpop.f32.mrb[16].mxu0 }
 0x107   :  { %595 = vst.msk [vmem:[%s991_s4 + $0x50] sm:$0xf] %vm582_vm2, %v662_v39  ;;  %v664_v53 = vpack.c.bf16 %v484_v47, %v484_v47  ;;  %v379_v54 = vmul.f32 %v904_v45, %v293_v51  ;;  %v702_v55 = vpop.f32.mrb[17].mxu1  ;;  %v377_v56 = vmul.f32 %v904_v45, %v220_v44  ;;  %v222_v57 = vpop.f32.mrb[17].mxu0 }
 0x108   :  { %v296_v58 = vpop.f32.mrb[18].mxu1  ;;  %594 = vst [vmem:[%s991_s4 + $0x48] sm:$0xff] %v661_v52  ;;  %v663_v59 = vpack.c.bf16 %v483_v40, %v482_v50  ;;  %v378_v61 = vmul.f32 %v904_v45, %v222_v57  ;;  %v224_v62 = vpop.f32.mrb[18].mxu0 }
 0x109   :  { %597 = vst.msk [vmem:[%s991_s4 + $0x5c] sm:$0xf] %vm582_vm2, %v664_v53  ;;  %v460_v60 = vadd.f32 %v432_v49, %v379_v54  ;;  %v703_v63 = vpop.f32.mrb[19].mxu1  ;;  %v458_v0 = vadd.f32 %v432_v49, %v377_v56  ;;  %v225_v1 = vpop.f32.mrb[19].mxu0 }
 0x10a   :  { %596 = vst [vmem:[%s991_s4 + $0x54] sm:$0xff] %v663_v59  ;;  %v459_v3 = vadd.f32 %v432_v49, %v378_v61 }
 0x10b   :  { %v487_v2 = vmax.f32 %v460_v60, 0.0  ;;  %v485_v4 = vmax.f32 %v458_v0, 0.0 }
 0x10c   :  { %v486_v6 = vmax.f32 %v459_v3, 0.0 }
 0x10d   :  { %v666_v5 = vpack.c.bf16 %v487_v2, %v487_v2 }
 0x10e   :  { %v665_v7 = vpack.c.bf16 %v486_v6, %v485_v4 }
 0x10f   :  { %599 = vst.msk [vmem:[%s991_s4 + $0x68] sm:$0xf] %vm582_vm2, %v666_v5 }
 0x110   :  { %598 = vst [vmem:[%s991_s4 + $0x60] sm:$0xff] %v665_v7 }

// kernel: ae_forward.9
= control target key start
LH: loop header
LB: loop body
LE: loop exit
PB: predicated region body
PF: predicated region fallthrough
CT: control target
= control target key end

     0   :  { %v1159_v1 = vmov 0   ;;  %vm257_vm0 = vcmask 261120   ;;  %v1160_v39 = vmov 0.0   ;;  %vm1161_vm1 = vmmov 0   ;;  %s1558_s3 = inlined_call_operand.vmem [shape: bf16[32,2408], index: 3, kind: input, shape index: {}]   ;;  %s1559_s0 = inlined_call_operand.vmem [shape: bf16[9,32], index: 0, kind: input, shape index: {}]   ;;  %s1560_s1 = inlined_call_operand.vmem [shape: f32[9,1], index: 1, kind: input, shape index: {}]   ;;  %s1561_s2 = inlined_call_operand.vmem [shape: f32[9,1], index: 2, kind: input, shape index: {}]   ;;  %s1562_s4 = inlined_call_operand.vmem [shape: bf16[9,2408], index: 4, kind: output, shape index: {}]  }
   0x1   :  { %v1102_v0 = vld [vmem:[%s1558_s3 + $0x4] ss:$76 sps:$4 sm:$0xff]   ;;  %293 = vmatprep.mubr.bf16.mxu0 %v1159_v1  ;;  %336 = vmatprep.mubr.bf16.mxu1 %v1159_v1  ;;  %v1104_v2 = vld [vmem:[%s1558_s3 + $0xc] ss:$76 sps:$4 sm:$0xff]   ;;  %v1107_v4 = vld [vmem:[%s1558_s3 + $0x8] ss:$76 sps:$4 sm:$0xff]  }
   0x2   :  { %1100 = vset.pattern.permute.xlu0 %v1159_v1  ;;  %1101 = vset.pattern.permute.xlu1 %v1159_v1  ;;  %v1106_v3 = vld [vmem:[%s1558_s3] ss:$76 sps:$4 sm:$0xff]   ;;  %v1108_v5 = vld [vmem:[%s1558_s3 + $0x9c] ss:$76 sps:$4 sm:$0xff]   ;;  %v1110_v6 = vld [vmem:[%s1558_s3 + $0xa4] ss:$76 sps:$4 sm:$0xff]  }
   0x3   :  { %261 = vmatprep.subr.bf16.mxu0 %v1102_v0  ;;  %304 = vmatprep.subr.bf16.mxu1 %v1104_v2  ;;  %v1112_v7 = vld [vmem:[%s1558_s3 + $0x98] ss:$76 sps:$4 sm:$0xff]   ;;  %v1113_v8 = vld [vmem:[%s1558_s3 + $0xa0] ss:$76 sps:$4 sm:$0xff]   ;;  %v1115_v10 = vld [vmem:[%s1558_s3 + $0x10] ss:$76 sps:$4 sm:$0xff]  }
   0x4   :  { %262 = vmatpush1.bf16.msra.mxu0 %v1106_v3  ;;  %305 = vmatpush1.bf16.msra.mxu1 %v1107_v4  ;;  %v1218_v9 = vld [vmem:[%s1559_s0] sm:$0x1f]   ;;  %v1120_v13 = vld [vmem:[%s1558_s3 + $0x1c] ss:$76 sps:$4 sm:$0xff]   ;;  %v1123_v14 = vld [vmem:[%s1558_s3 + $0xac] ss:$76 sps:$4 sm:$0xff]  }
   0x5   :  { %263 = vmatprep.subr.bf16.mxu0 %v1108_v5  ;;  %306 = vmatprep.subr.bf16.mxu1 %v1110_v6  ;;  %v1117_v11 = vld [vmem:[%s1558_s3 + $0x14] ss:$76 sps:$4 sm:$0xff]   ;;  %v1118_v12 = vld [vmem:[%s1558_s3 + $0x18] ss:$76 sps:$4 sm:$0xff]   ;;  %v1124_v17 = vld [vmem:[%s1558_s3 + $0xb0] ss:$76 sps:$4 sm:$0xff]  }
   0x6   :  { %v1126_v15 = vld [vmem:[%s1558_s3 + $0xb4] ss:$76 sps:$4 sm:$0xff]   ;;  %v1129_v18 = vld [vmem:[%s1558_s3 + $0x24] ss:$76 sps:$4 sm:$0xff]   ;;  %v1132_v19 = vld [vmem:[%s1558_s3 + $0x2c] ss:$76 sps:$4 sm:$0xff]  }
   0x7   :  { %v1121_v16 = vld [vmem:[%s1558_s3 + $0xa8] ss:$76 sps:$4 sm:$0xff]   ;;  %v1127_v20 = vld [vmem:[%s1558_s3 + $0x20] ss:$76 sps:$4 sm:$0xff]   ;;  %v1138_v23 = vld [vmem:[%s1558_s3 + $0xc4] ss:$76 sps:$4 sm:$0xff]  }
   0x8   :  { %264 = vmatpush1.bf16.msra.mxu0 %v1112_v7  ;;  %307 = vmatpush1.bf16.msra.mxu1 %v1113_v8  ;;  %v1130_v21 = vld [vmem:[%s1558_s3 + $0x28] ss:$76 sps:$4 sm:$0xff]   ;;  %v1133_v24 = vld [vmem:[%s1558_s3 + $0xb8] ss:$76 sps:$4 sm:$0xff]   ;;  %v1136_v25 = vld [vmem:[%s1558_s3 + $0xc0] ss:$76 sps:$4 sm:$0xff]  }
   0x9   :  { %347 = vmatprep.subr.bf16.mxu0 %v1117_v11  ;;  %390 = vmatprep.subr.bf16.mxu1 %v1120_v13  ;;  %v1135_v22 = vld [vmem:[%s1558_s3 + $0xbc] ss:$76 sps:$4 sm:$0xff]   ;;  %v1141_v26 = vld [vmem:[%s1558_s3 + $0x34] ss:$76 sps:$4 sm:$0xff]   ;;  %v1142_v29 = vld [vmem:[%s1558_s3 + $0x38] ss:$76 sps:$4 sm:$0xff]  }
   0xa   :  { %v1144_v27 = vld [vmem:[%s1558_s3 + $0x3c] ss:$76 sps:$4 sm:$0xff]   ;;  %v1147_v30 = vld [vmem:[%s1558_s3 + $0xcc] ss:$76 sps:$4 sm:$0xff]   ;;  %v1150_v31 = vld [vmem:[%s1558_s3 + $0xd4] ss:$76 sps:$4 sm:$0xff]  }
   0xb   :  { %1036 = vmatmul.mubr.msk.bf16.vlgmr.msra.gmra.mrb[0].mxu0 %vm257_vm0, %v1218_v9  ;;  %1037 = vmatmul.mubr.msk.bf16.vlgmr.msra.gmra.mrb[0].mxu1 %vm257_vm0, %v1218_v9  ;;  %v1139_v28 = vld [vmem:[%s1558_s3 + $0x30] ss:$76 sps:$4 sm:$0xff]   ;;  %v1145_v32 = vld [vmem:[%s1558_s3 + $0xc8] ss:$76 sps:$4 sm:$0xff]   ;;  %v1151_v37 = vld [vmem:[%s1558_s3 + $0x40] ss:$76 sps:$4 sm:$0xff]  }
   0xc   :  { %348 = vmatpush1.bf16.msra.mxu0 %v1115_v10  ;;  %391 = vmatpush1.bf16.msra.mxu1 %v1118_v12  ;;  %v1148_v33 = vld [vmem:[%s1558_s3 + $0xd0] ss:$76 sps:$4 sm:$0xff]   ;;  %v690_v34 = vld [vmem:[%s1560_s1 + $0x8] sm:$0x1]  ;;  %v1155_v41 = vld [vmem:[%s1558_s3 + $0xd8] ss:$76 sps:$4 sm:$0xff]  }
   0xd   :  { %349 = vmatprep.subr.bf16.mxu0 %v1123_v14  ;;  %392 = vmatprep.subr.bf16.mxu1 %v1126_v15  ;;  %v740_v35 = vld [vmem:[%s1561_s2 + $0x8] sm:$0x1]  ;;  %v1153_v36 = vld [vmem:[%s1558_s3 + $0x44] ss:$76 sps:$4 sm:$0xff]   ;;  %v1158_v42 = vld [vmem:[%s1558_s3 + $0xe0] ss:$76 sps:$4 sm:$0xff]  }
   0xe   :  { %379 = vmatprep.mubr.bf16.mxu0 %v1159_v1  ;;  %422 = vmatprep.mubr.bf16.mxu1 %v1159_v1  ;;  %v1154_v38 = vld [vmem:[%s1558_s3 + $0x48] ss:$76 sps:$4 sm:$0xff]   ;;  %v689_v43 = vld [vmem:[%s1560_s1] sm:$0xff]  ;;  %vm954_vm2 = vcmask 1040384   ;;  %vm955_vm3 = vsmask.f32 256 }
   0xf   :  { %698 = vperm.xlu0 %1100, %v690_v34   ;;  %748 = vperm.xlu1 %1101, %v740_v35   ;;  %v1157_v40 = vld [vmem:[%s1558_s3 + $0xdc] ss:$76 sps:$4 sm:$0xff]   ;;  %v739_v44 = vld [vmem:[%s1561_s2] sm:$0xff]  ;;  %vm957_vm4 = vcmask 1044484   ;;  %vm958_vm5 = vsmask.f32 4352  ;;  %vm1373_vm6 = vmand %vm954_vm2, %vm955_vm3 }
  0x10   :  { %350 = vmatpush1.bf16.msra.mxu0 %v1121_v16  ;;  %393 = vmatpush1.bf16.msra.mxu1 %v1124_v17  ;;  %vm959_vm7 = vmand %vm957_vm4, %vm958_vm5  ;;  %vm952_vm9 = vcmask 846848   ;;  %vm988_vm10 = vcmask 843776  }
  0x11   :  { %433 = vmatprep.subr.bf16.mxu0 %v1129_v18  ;;  %476 = vmatprep.subr.bf16.mxu1 %v1132_v19  ;;  %vm1383_vm8 = vmor %vm959_vm7, %vm1373_vm6 }
  0x12   :  { %vm989_vm11 = vmand %vm988_vm10, %vm955_vm3 }
  0x13   :  { %1038 = vmatmul.mubr.msk.bf16.vlgmr.msra.gmra.mrb[4].mxu0 %vm257_vm0, %v1218_v9  ;;  %1039 = vmatmul.mubr.msk.bf16.vlgmr.msra.gmra.mrb[4].mxu1 %vm257_vm0, %v1218_v9 }
  0x14   :  { %434 = vmatpush1.bf16.msra.mxu0 %v1127_v20  ;;  %477 = vmatpush1.bf16.msra.mxu1 %v1130_v21 }
  0x15   :  { %435 = vmatprep.subr.bf16.mxu0 %v1135_v22  ;;  %478 = vmatprep.subr.bf16.mxu1 %v1138_v23  ;;  %v961_v23 = vld [vmem:[%s1562_s4 + $0x4c] sm:$0x11] }
  0x16   :  { %465 = vmatprep.mubr.bf16.mxu0 %v1159_v1  ;;  %508 = vmatprep.mubr.bf16.mxu1 %v1159_v1 }
  0x17   :  { %693 = vperm.xlu0 %1100, %v689_v43   ;;  %743 = vperm.xlu1 %1101, %v739_v44  }
  0x18   :  { %436 = vmatpush1.bf16.msra.mxu0 %v1133_v24  ;;  %479 = vmatpush1.bf16.msra.mxu1 %v1136_v25  ;;  %v964_v24 = vld [vmem:[%s1562_s4 + $0x54] sm:$0x11] }
  0x19   :  { %519 = vmatprep.subr.bf16.mxu0 %v1141_v26  ;;  %562 = vmatprep.subr.bf16.mxu1 %v1144_v27 }
  0x1b   :  { %1040 = vmatmul.mubr.msk.bf16.vlgmr.msra.gmra.mrb[8].mxu0 %vm257_vm0, %v1218_v9  ;;  %1041 = vmatmul.mubr.msk.bf16.vlgmr.msra.gmra.mrb[8].mxu1 %vm257_vm0, %v1218_v9 }
  0x1c   :  { %520 = vmatpush1.bf16.msra.mxu0 %v1139_v28  ;;  %563 = vmatpush1.bf16.msra.mxu1 %v1142_v29 }
  0x1d   :  { %521 = vmatprep.subr.bf16.mxu0 %v1147_v30  ;;  %564 = vmatprep.subr.bf16.mxu1 %v1150_v31 }
  0x1e   :  { %551 = vmatprep.mubr.bf16.mxu0 %v1159_v1  ;;  %594 = vmatprep.mubr.bf16.mxu1 %v1159_v1 }
  0x20   :  { %522 = vmatpush1.bf16.msra.mxu0 %v1145_v32  ;;  %565 = vmatpush1.bf16.msra.mxu1 %v1148_v33 }
  0x21   :  { %605 = vmatprep.subr.bf16.mxu0 %v1153_v36  ;;  %1089 = vmatprep.subr.bf16.mxu1 %v1160_v39 }
  0x23   :  { %1042 = vmatmul.mubr.msk.bf16.vlgmr.msra.gmra.mrb[12].mxu0 %vm257_vm0, %v1218_v9  ;;  %1043 = vmatmul.mubr.msk.bf16.vlgmr.msra.gmra.mrb[12].mxu1 %vm257_vm0, %v1218_v9 }
  0x24   :  { %606 = vmatpush1.bf16.msra.mxu0 %v1151_v37  ;;  %1090 = vmatpush3.bf16.msra.mxu1 %v1154_v38 }
  0x25   :  { %607 = vmatprep.subr.bf16.mxu0 %v1157_v40  ;;  %1091 = vmatprep.subr.bf16.mxu1 %v1160_v39 }
  0x26   :  { %637 = vmatprep.mubr.bf16.mxu0 %v1159_v1  ;;  %1093 = vmatprep.mubr.msk.bf16.mxu1 %vm1161_vm1, %v1160_v39 }
  0x28   :  { %608 = vmatpush1.bf16.msra.mxu0 %v1155_v41  ;;  %1092 = vmatpush3.bf16.msra.mxu1 %v1158_v42 }
  0x2b   :  { %1044 = vmatmul.mubr.msk.bf16.vlgmr.msra.gmra.mrb[16].mxu0 %vm257_vm0, %v1218_v9  ;;  %1094 = vmatmul.mubr.msk.bf16.vlgmr.msra.gmra.mrb[16].mxu1 %vm257_vm0, %v1218_v9 }
  0x8e   :  { %v1349_v45 = vpop.permute.xlu0 %698  ;;  %v1351_v46 = vpop.permute.xlu1 %748 }
  0x96   :  { %v1353_v47 = vpop.permute.xlu0 %693  ;;  %v1355_v48 = vpop.permute.xlu1 %743 }
  0xde   :  { %v295_v49 = vpop.f32.mrb[0].mxu0  ;;  %v338_v50 = vpop.f32.mrb[0].mxu1 }
  0xdf   :  { %v701_v51 = vmul.f32 %v1353_v47, %v295_v49  ;;  %v703_v52 = vmul.f32 %v1353_v47, %v338_v50  ;;  %v297_v53 = vpop.f32.mrb[1].mxu0  ;;  %v340_v54 = vpop.f32.mrb[1].mxu1 }
  0xe0   :  { %v702_v55 = vmul.f32 %v1353_v47, %v297_v53  ;;  %v704_v56 = vmul.f32 %v1353_v47, %v340_v54  ;;  %v299_v57 = vpop.f32.mrb[2].mxu0  ;;  %v342_v58 = vpop.f32.mrb[2].mxu1 }
  0xe1   :  { %v720_v59 = vmul.f32 %v1349_v45, %v299_v57  ;;  %v722_v60 = vmul.f32 %v1349_v45, %v342_v58  ;;  %v751_v61 = vadd.f32 %v1355_v48, %v701_v51  ;;  %v753_v62 = vadd.f32 %v1355_v48, %v703_v52  ;;  %v301_v63 = vpop.f32.mrb[3].mxu0  ;;  %v344_v0 = vpop.f32.mrb[3].mxu1 }
  0xe2   :  { %v752_v1 = vadd.f32 %v1355_v48, %v702_v55  ;;  %v754_v2 = vadd.f32 %v1355_v48, %v704_v56  ;;  %v721_v3 = vmul.f32 %v1349_v45, %v301_v63  ;;  %v723_v4 = vmul.f32 %v1349_v45, %v344_v0 }
  0xe3   :  { %v770_v5 = vadd.f32 %v1351_v46, %v720_v59  ;;  %v772_v6 = vadd.f32 %v1351_v46, %v722_v60  ;;  %v789_v7 = vmax.f32 %v751_v61, 0.0  ;;  %v791_v8 = vmax.f32 %v753_v62, 0.0 }
  0xe4   :  { %v790_v10 = vmax.f32 %v752_v1, 0.0  ;;  %v792_v11 = vmax.f32 %v754_v2, 0.0  ;;  %v771_v12 = vadd.f32 %v1351_v46, %v721_v3  ;;  %v773_v13 = vadd.f32 %v1351_v46, %v723_v4 }
  0xe5   :  { %v808_v14 = vmax.f32 %v770_v5, 0.0  ;;  %v810_v15 = vmax.f32 %v772_v6, 0.0 }
  0xe6   :  { %v1066_v16 = vpack.c.bf16 %v790_v10, %v789_v7  ;;  %v1067_v17 = vpack.c.bf16 %v792_v11, %v791_v8  ;;  %v809_v18 = vmax.f32 %v771_v12, 0.0  ;;  %v811_v19 = vmax.f32 %v773_v13, 0.0  ;;  %v381_v20 = vpop.f32.mrb[4].mxu0  ;;  %v424_v21 = vpop.f32.mrb[4].mxu1  ;;  %v967_v11 = vld [vmem:[%s1562_s4 + $0x5c] sm:$0x11] }
  0xe7   :  { %v705_v25 = vmul.f32 %v1353_v47, %v381_v20  ;;  %v707_v26 = vmul.f32 %v1353_v47, %v424_v21  ;;  %v383_v27 = vpop.f32.mrb[5].mxu0  ;;  %v426_v28 = vpop.f32.mrb[5].mxu1  ;;  %v970_v12 = vld [vmem:[%s1562_s4 + $0x64] sm:$0x11] }
  0xe8   :  { %943 = vst [vmem:[%s1562_s4] sm:$0xff] %v1066_v16  ;;  %944 = vst [vmem:[%s1562_s4 + $0x8] sm:$0xff] %v1067_v17  ;;  %v1076_v29 = vpack.c.bf16 %v809_v18, %v808_v14  ;;  %v1077_v30 = vpack.c.bf16 %v811_v19, %v810_v15  ;;  %v706_v31 = vmul.f32 %v1353_v47, %v383_v27  ;;  %v385_v33 = vpop.f32.mrb[6].mxu0  ;;  %v428_v34 = vpop.f32.mrb[6].mxu1 }
  0xe9   :  { %v708_v32 = vmul.f32 %v1353_v47, %v426_v28  ;;  %v755_v35 = vadd.f32 %v1355_v48, %v705_v25  ;;  %v757_v36 = vadd.f32 %v1355_v48, %v707_v26  ;;  %v724_v37 = vmul.f32 %v1349_v45, %v385_v33  ;;  %v387_v39 = vpop.f32.mrb[7].mxu0  ;;  %v430_v40 = vpop.f32.mrb[7].mxu1 }
  0xea   :  { %v726_v38 = vmul.f32 %v1349_v45, %v428_v34  ;;  %v962_v41 = vsel %vm1383_vm8, %v1076_v29, %v961_v23  ;;  %v965_v42 = vsel %vm1383_vm8, %v1077_v30, %v964_v24  ;;  %v756_v43 = vadd.f32 %v1355_v48, %v706_v31 }
  0xeb   :  { %v758_v44 = vadd.f32 %v1355_v48, %v708_v32  ;;  %963 = vst [vmem:[%s1562_s4 + $0x4c] sm:$0x11] %v962_v41  ;;  %966 = vst [vmem:[%s1562_s4 + $0x54] sm:$0x11] %v965_v42  ;;  %v793_v49 = vmax.f32 %v755_v35, 0.0  ;;  %v795_v50 = vmax.f32 %v757_v36, 0.0  ;;  %v774_v51 = vadd.f32 %v1351_v46, %v724_v37 }
  0xec   :  { %v776_v52 = vadd.f32 %v1351_v46, %v726_v38  ;;  %v794_v53 = vmax.f32 %v756_v43, 0.0  ;;  %v725_v55 = vmul.f32 %v1349_v45, %v387_v39  ;;  %v727_v56 = vmul.f32 %v1349_v45, %v430_v40 }
  0xed   :  { %v796_v54 = vmax.f32 %v758_v44, 0.0  ;;  %v812_v57 = vmax.f32 %v774_v51, 0.0 }
  0xee   :  { %v814_v58 = vmax.f32 %v776_v52, 0.0  ;;  %v1068_v59 = vpack.c.bf16 %v794_v53, %v793_v49  ;;  %v775_v61 = vadd.f32 %v1351_v46, %v725_v55  ;;  %v777_v62 = vadd.f32 %v1351_v46, %v727_v56  ;;  %v467_v63 = vpop.f32.mrb[8].mxu0  ;;  %v510_v0 = vpop.f32.mrb[8].mxu1 }
  0xef   :  { %v1069_v60 = vpack.c.bf16 %v796_v54, %v795_v50  ;;  %v709_v1 = vmul.f32 %v1353_v47, %v467_v63  ;;  %v711_v2 = vmul.f32 %v1353_v47, %v510_v0  ;;  %v469_v3 = vpop.f32.mrb[9].mxu0  ;;  %v512_v4 = vpop.f32.mrb[9].mxu1 }
  0xf0   :  { %945 = vst [vmem:[%s1562_s4 + $0x10] sm:$0xff] %v1068_v59  ;;  %v813_v5 = vmax.f32 %v775_v61, 0.0  ;;  %v815_v6 = vmax.f32 %v777_v62, 0.0  ;;  %v710_v7 = vmul.f32 %v1353_v47, %v469_v3  ;;  %v712_v8 = vmul.f32 %v1353_v47, %v512_v4  ;;  %v471_v9 = vpop.f32.mrb[10].mxu0  ;;  %v514_v10 = vpop.f32.mrb[10].mxu1 }
  0xf1   :  { %946 = vst [vmem:[%s1562_s4 + $0x18] sm:$0xff] %v1069_v60  ;;  %v759_v13 = vadd.f32 %v1355_v48, %v709_v1  ;;  %v761_v14 = vadd.f32 %v1355_v48, %v711_v2  ;;  %v728_v15 = vmul.f32 %v1349_v45, %v471_v9  ;;  %v730_v16 = vmul.f32 %v1349_v45, %v514_v10  ;;  %v473_v17 = vpop.f32.mrb[11].mxu0  ;;  %v516_v18 = vpop.f32.mrb[11].mxu1  ;;  %v973_v60 = vld [vmem:[%s1562_s4 + $0x6c] sm:$0x11] }
  0xf2   :  { %v1078_v19 = vpack.c.bf16 %v813_v5, %v812_v57  ;;  %v1079_v20 = vpack.c.bf16 %v815_v6, %v814_v58  ;;  %v760_v21 = vadd.f32 %v1355_v48, %v710_v7  ;;  %v762_v23 = vadd.f32 %v1355_v48, %v712_v8  ;;  %v976_v61 = vld [vmem:[%s1562_s4 + $0x74] sm:$0x11] }
  0xf3   :  { %v797_v24 = vmax.f32 %v759_v13, 0.0  ;;  %v799_v25 = vmax.f32 %v761_v14, 0.0  ;;  %v778_v26 = vadd.f32 %v1351_v46, %v728_v15  ;;  %v780_v27 = vadd.f32 %v1351_v46, %v730_v16 }
  0xf4   :  { %v968_v28 = vsel %vm1383_vm8, %v1078_v19, %v967_v11  ;;  %v971_v29 = vsel %vm1383_vm8, %v1079_v20, %v970_v12  ;;  %v798_v30 = vmax.f32 %v760_v21, 0.0  ;;  %v800_v31 = vmax.f32 %v762_v23, 0.0 }
  0xf5   :  { %969 = vst [vmem:[%s1562_s4 + $0x5c] sm:$0x11] %v968_v28  ;;  %972 = vst [vmem:[%s1562_s4 + $0x64] sm:$0x11] %v971_v29  ;;  %v729_v32 = vmul.f32 %v1349_v45, %v473_v17  ;;  %v731_v33 = vmul.f32 %v1349_v45, %v516_v18  ;;  %v816_v36 = vmax.f32 %v778_v26, 0.0  ;;  %v818_v37 = vmax.f32 %v780_v27, 0.0 }
  0xf6   :  { %v1070_v34 = vpack.c.bf16 %v798_v30, %v797_v24  ;;  %v1071_v35 = vpack.c.bf16 %v800_v31, %v799_v25  ;;  %v553_v38 = vpop.f32.mrb[12].mxu0  ;;  %v596_v39 = vpop.f32.mrb[12].mxu1 }
  0xf7   :  { %v779_v40 = vadd.f32 %v1351_v46, %v729_v32  ;;  %v781_v41 = vadd.f32 %v1351_v46, %v731_v33  ;;  %v713_v42 = vmul.f32 %v1353_v47, %v553_v38  ;;  %v715_v43 = vmul.f32 %v1353_v47, %v596_v39  ;;  %v555_v44 = vpop.f32.mrb[13].mxu0  ;;  %v598_v49 = vpop.f32.mrb[13].mxu1 }
  0xf8   :  { %947 = vst [vmem:[%s1562_s4 + $0x20] sm:$0xff] %v1070_v34  ;;  %948 = vst [vmem:[%s1562_s4 + $0x28] sm:$0xff] %v1071_v35  ;;  %v714_v50 = vmul.f32 %v1353_v47, %v555_v44  ;;  %v716_v51 = vmul.f32 %v1353_v47, %v598_v49  ;;  %v557_v52 = vpop.f32.mrb[14].mxu0  ;;  %v600_v53 = vpop.f32.mrb[14].mxu1 }
  0xf9   :  { %v817_v54 = vmax.f32 %v779_v40, 0.0  ;;  %v819_v55 = vmax.f32 %v781_v41, 0.0  ;;  %v763_v56 = vadd.f32 %v1355_v48, %v713_v42  ;;  %v765_v57 = vadd.f32 %v1355_v48, %v715_v43  ;;  %v559_v58 = vpop.f32.mrb[15].mxu0  ;;  %v602_v59 = vpop.f32.mrb[15].mxu1 }
  0xfa   :  { %v764_v62 = vadd.f32 %v1355_v48, %v714_v50  ;;  %v766_v63 = vadd.f32 %v1355_v48, %v716_v51  ;;  %v732_v0 = vmul.f32 %v1349_v45, %v557_v52  ;;  %v734_v1 = vmul.f32 %v1349_v45, %v600_v53 }
  0xfb   :  { %v1080_v2 = vpack.c.bf16 %v817_v54, %v816_v36  ;;  %v1081_v3 = vpack.c.bf16 %v819_v55, %v818_v37  ;;  %v801_v4 = vmax.f32 %v763_v56, 0.0  ;;  %v803_v5 = vmax.f32 %v765_v57, 0.0  ;;  %v979_v36 = vld [vmem:[%s1562_s4 + $0x7c] sm:$0x11]  ;;  %v982_v37 = vld [vmem:[%s1562_s4 + $0x84] sm:$0x11] }
  0xfc   :  { %v802_v6 = vmax.f32 %v764_v62, 0.0  ;;  %v804_v7 = vmax.f32 %v766_v63, 0.0  ;;  %v782_v8 = vadd.f32 %v1351_v46, %v732_v0  ;;  %v784_v9 = vadd.f32 %v1351_v46, %v734_v1 }
  0xfd   :  { %v974_v10 = vsel %vm1383_vm8, %v1080_v2, %v973_v60  ;;  %v977_v11 = vsel %vm1383_vm8, %v1081_v3, %v976_v61  ;;  %v733_v12 = vmul.f32 %v1349_v45, %v559_v58  ;;  %v735_v13 = vmul.f32 %v1349_v45, %v602_v59  ;;  %v985_v58 = vld [vmem:[%s1562_s4 + $0x8c] sm:$0x11] }
  0xfe   :  { %975 = vst [vmem:[%s1562_s4 + $0x6c] sm:$0x11] %v974_v10  ;;  %978 = vst [vmem:[%s1562_s4 + $0x74] sm:$0x11] %v977_v11  ;;  %v1072_v14 = vpack.c.bf16 %v802_v6, %v801_v4  ;;  %v1073_v15 = vpack.c.bf16 %v804_v7, %v803_v5  ;;  %v820_v16 = vmax.f32 %v782_v8, 0.0  ;;  %v822_v17 = vmax.f32 %v784_v9, 0.0 }
  0xff   :  { %v639_v18 = vpop.f32.mrb[16].mxu0  ;;  %v682_v19 = vpop.f32.mrb[16].mxu1  ;;  %v783_v20 = vadd.f32 %v1351_v46, %v733_v12  ;;  %v785_v21 = vadd.f32 %v1351_v46, %v735_v13 }
 0x100   :  { %v717_v23 = vmul.f32 %v1353_v47, %v639_v18  ;;  %v719_v24 = vmul.f32 %v1353_v47, %v682_v19  ;;  %v641_v25 = vpop.f32.mrb[17].mxu0  ;;  %v1095_v26 = vpop.f32.mrb[17].mxu1  ;;  %949 = vst [vmem:[%s1562_s4 + $0x30] sm:$0xff] %v1072_v14  ;;  %950 = vst [vmem:[%s1562_s4 + $0x38] sm:$0xff] %v1073_v15 }
 0x101   :  { %v718_v27 = vmul.f32 %v1353_v47, %v641_v25  ;;  %v643_v28 = vpop.f32.mrb[18].mxu0  ;;  %v685_v29 = vpop.f32.mrb[18].mxu1  ;;  %v821_v30 = vmax.f32 %v783_v20, 0.0  ;;  %v823_v31 = vmax.f32 %v785_v21, 0.0 }
 0x102   :  { %v767_v32 = vadd.f32 %v1355_v48, %v717_v23  ;;  %v769_v33 = vadd.f32 %v1355_v48, %v719_v24  ;;  %v645_v34 = vpop.f32.mrb[19].mxu0  ;;  %v1096_v35 = vpop.f32.mrb[19].mxu1  ;;  %v736_v38 = vmul.f32 %v1349_v45, %v643_v28  ;;  %v738_v39 = vmul.f32 %v1349_v45, %v685_v29 }
 0x103   :  { %v768_v47 = vadd.f32 %v1355_v48, %v718_v27  ;;  %v737_v40 = vmul.f32 %v1349_v45, %v645_v34  ;;  %v1082_v41 = vpack.c.bf16 %v821_v30, %v820_v16  ;;  %v1083_v42 = vpack.c.bf16 %v823_v31, %v822_v17 }
 0x104   :  { %v805_v43 = vmax.f32 %v767_v32, 0.0  ;;  %v807_v44 = vmax.f32 %v769_v33, 0.0  ;;  %v786_v50 = vadd.f32 %v1351_v46, %v736_v38  ;;  %v788_v51 = vadd.f32 %v1351_v46, %v738_v39 }
 0x105   :  { %v806_v49 = vmax.f32 %v768_v47, 0.0  ;;  %v787_v52 = vadd.f32 %v1351_v46, %v737_v40  ;;  %v980_v48 = vsel %vm1383_vm8, %v1082_v41, %v979_v36  ;;  %v983_v53 = vsel %vm1383_vm8, %v1083_v42, %v982_v37  ;;  %v990_v46 = vld [vmem:[%s1562_s4 + $0x94] sm:$0x1] }
 0x106   :  { %v1075_v54 = vpack.c.bf16 %v807_v44, %v807_v44  ;;  %981 = vst [vmem:[%s1562_s4 + $0x7c] sm:$0x11] %v980_v48  ;;  %984 = vst [vmem:[%s1562_s4 + $0x84] sm:$0x11] %v983_v53  ;;  %v824_v55 = vmax.f32 %v786_v50, 0.0  ;;  %v826_v56 = vmax.f32 %v788_v51, 0.0 }
 0x107   :  { %v1074_v45 = vpack.c.bf16 %v806_v49, %v805_v43  ;;  %v825_v57 = vmax.f32 %v787_v52, 0.0 }
 0x108   :  { %953 = vst.msk [vmem:[%s1562_s4 + $0x48] sm:$0xf] %vm952_vm9, %v1075_v54  ;;  %v1085_v59 = vpack.c.bf16 %v826_v56, %v826_v56 }
 0x109   :  { %951 = vst [vmem:[%s1562_s4 + $0x40] sm:$0xff] %v1074_v45  ;;  %v1084_v60 = vpack.c.bf16 %v825_v57, %v824_v55 }
 0x10a   :  { %v991_v61 = vsel %vm989_vm11, %v1085_v59, %v990_v46 }
 0x10b   :  { %v986_v62 = vsel %vm1383_vm8, %v1084_v60, %v985_v58  ;;  %992 = vst [vmem:[%s1562_s4 + $0x94] sm:$0x1] %v991_v61 }
 0x10c   :  { %987 = vst [vmem:[%s1562_s4 + $0x8c] sm:$0x11] %v986_v62 }

</bundles_post_ra>
